<compile_context>
chip_gen: v7x
topology: tpu7x:2x2x1
jax: 0.10.0
libtpu: 0.0.40
codegen_flags: <defaults>
</compile_context>

<pallas_src>
import functools
import math

import numpy as np
import jax
import jax.numpy as jnp
from jax.experimental import pallas as pl
from jax.experimental.pallas import tpu as pltpu


# ----------------------------------------------------------------------------
# Pallas kernel: grid = (batch, lane_tile)
# ----------------------------------------------------------------------------
def _ddsp_synth_kernel(pitch_ref, tamp_ref, amps_ref, nf_ref, noise_ref,
                       u_ref, tf_ref, e1_ref, eh_ref, grp_ref,
                       cb_ref, cm_ref, kno_ref, out_ref,
                       *, block_size, sr, add_noise):
    f32 = jnp.float32
    L = block_size
    two_pi = 2.0 * math.pi

    pitch = pitch_ref[0]        # (S, F)   per-source pitch per frame
    tamp = tamp_ref[0]          # (S, F)   per-source total amplitude (inactive sources zeroed)
    amps = amps_ref[0]          # (SH, F)  raw harmonic amplitudes, row s*H+h
    nfp = nf_ref[0]             # (NBp, F) noise-filter bands (zero-padded to a multiple of 8)
    nz = noise_ref[0]           # (L, F)   noise taps, nz[m, f] = noise[f, m]

    SH = amps.shape[0]
    NBp = nfp.shape[0]

    E1 = e1_ref[...]            # (SH, S)  one-hot source expansion
    EH = eh_ref[...]            # (SH, S)  expansion scaled by harmonic number hno
    GRP = grp_ref[...]          # (SH, SH) block-diagonal per-source group-sum
    TF = tf_ref[...]            # (F, F)   L * exclusive frame prefix (replaces the old TU table)

    # ---- frame-domain prep (tiny, F lanes, recomputed per lane tile — negligible) ----
    w_s = (two_pi / sr) * pitch                                   # rad / sample       (S, F)
    wH = jnp.dot(EH, w_s, preferred_element_type=f32)             # hno * omega        (SH, F)
    prefH = jnp.dot(wH, TF, preferred_element_type=f32)           # hno*L*sum_{f'<f} w (SH, F)
    prefH = prefH - two_pi * jnp.floor(prefH * (1.0 / two_pi))    # wrap mod 2*pi in frame domain

    # remove_above_nyquist: hno*pitch < sr/2  <=>  wH < pi
    a = amps * ((wH < math.pi).astype(f32) + 1e-4)
    gsum = jnp.dot(GRP, a, preferred_element_type=f32)            # per-source harmonic sums
    a = a * pl.reciprocal(gsum, approx=True)                      # EUP recip, not a VPU divide
    a = a * jnp.dot(E1, tamp, preferred_element_type=f32)         # scale by total amplitude

    # ---- ONE fused placement matmul against the U column tile ----
    lhs = jnp.concatenate([wH, prefH, a, nfp, nz], axis=0)        # (3*SH + NBp + L, F)
    r = jnp.dot(lhs, u_ref[...], preferred_element_type=f32)      # (rows, FL_TILE)

    wH_up = r[0:SH]                                               # hno * omega per sample
    prefH_up = r[SH:2 * SH]                                       # wrapped hno * phase prefix
    a_up = r[2 * SH:3 * SH]                                       # per-sample amplitudes
    p_up = r[3 * SH:3 * SH + NBp]                                 # noise-filter params per sample
    nz_up = r[3 * SH + NBp:3 * SH + NBp + L]                      # noise taps per sample

    # ---- harmonic branch: one sin over the dense (SH, FL_TILE) slab ----
    kno = kno_ref[...]                                            # (1, FL_TILE): in-frame idx + 1
    harm = jnp.sin(prefH_up + kno * wH_up) * a_up
    sig = jnp.sum(harm, axis=0, keepdims=True)                    # (1, FL_TILE)

    # ---- filtered-noise branch: cosine-basis irfft + causal conv (rolls + one masked reduce) ----
    if add_noise:
        ir_row = jnp.sum(p_up * cb_ref[...], axis=0, keepdims=True)   # (1, FL_TILE) impulse resp.
        rolled = [ir_row]
        # TODO(synk): for large block_size replace the unrolled per-tap rolls with a single
        # strided pltpu.roll over an (L, FL_TILE) broadcast (shift=0, stride=1, stride_axis=0).
        for m in range(1, L):
            rolled.append(pltpu.roll(ir_row, shift=m, axis=1))
        stack = jnp.concatenate(rolled, axis=0)                   # (L, FL_TILE), row m = shift m
        conv = jnp.sum(stack * cm_ref[...] * nz_up, axis=0, keepdims=True)
        sig = sig + conv

    out_ref[0] = sig                                              # lane-dense store (mult. of 128)


# ----------------------------------------------------------------------------
# Parameter setup + wrapper (encoder/decoder stand-ins + layout glue in plain JAX)
# ----------------------------------------------------------------------------
def init_params(key, hidden, n_harm, n_bands, max_sources, block_size):
    k1, k2, k3, k4 = jax.random.split(key, 4)
    return {
        "enc_w": jax.random.normal(k1, (block_size, hidden), jnp.float32) * 0.1,
        "dec_harmo_w": jax.random.normal(k2, (max_sources, hidden, n_harm), jnp.float32) * 0.3,
        "dec_amp_w": jax.random.normal(k3, (max_sources, hidden, 1), jnp.float32) * 0.3,
        "dec_noise_w": jax.random.normal(k4, (hidden, n_bands), jnp.float32) * 0.3,
    }
    # TODO(synk): Reverb(sampling_rate, sampling_rate) parameters omitted — the provided
    # forward never applies self.reverb.


def _pick_fl_tile(FL, L, target=1024):
    """Largest tile <= target that divides FL and is a multiple of lcm(L, 128)."""
    base = int(np.lcm(L, 128))
    if FL <= base or FL % base != 0:
        return FL
    best = base
    t = base
    while t <= min(FL, target):
        if FL % t == 0:
            best = t
        t += base
    return best


def ddsp_multi_forward(signal, pitch_list, loudness, params, *, sampling_rate, block_size,
                       n_harmonics, n_bands, n_sources, add_noise, noise_key, fl_tile=None):
    B = signal.shape[0]
    L = int(block_size)
    F = signal.shape[1] // L
    H = int(n_harmonics)
    NB = int(n_bands)
    S = pitch_list.shape[1]
    SH = S * H
    FL = F * L
    # TODO(synk): general case filter_size != block_size needs a zero-pad between the two
    # rolls of amp_to_impulse_response; we require 2*(NB-1) == block_size.
    assert 2 * (NB - 1) == L, "noise-filter irfft length must equal block_size"

    if fl_tile is None:
        fl_tile = _pick_fl_tile(FL, L)
    FLT = int(fl_tile)
    assert FL % FLT == 0 and FLT % L == 0 and (FLT % 128 == 0 or FLT == FL)
    n_tiles = FL // FLT

    # ---- encoder / decoder stand-ins (plain JAX glue) ----
    # TODO(synk): Z_Encoder and DecoderMulti sources were not provided; deterministic
    # linear stand-ins produce latent / amp_list / harmo_amps_list / noise_filter.
    frames = signal.reshape(B, F, L)
    latent = jnp.tanh(frames @ params["enc_w"])                                   # [B, F, hidden]
    harmo_list = [jax.nn.sigmoid(latent @ params["dec_harmo_w"][s]) for s in range(S)]   # [B,F,H]
    tamp_list = [jax.nn.sigmoid(latent @ params["dec_amp_w"][s] + loudness)[..., 0]
                 for s in range(S)]                                               # [B,F]
    noise_filter = jax.nn.sigmoid(latent @ params["dec_noise_w"]) * 0.1           # [B,F,NB]

    # torch.rand(...) * 2 - 1 noise for the filtered-noise branch
    noise = jax.random.uniform(noise_key, (B, F, L), jnp.float32) * 2.0 - 1.0

    # ---- kernel inputs: NO per-harmonic duplication (expansion happens in-kernel) ----
    pitch_bsf = pitch_list[..., 0]                                   # [B, S, F]
    src_mask = (jnp.arange(S) < n_sources).astype(jnp.float32)       # inactive sources -> 0 amp
    tamp_bsf = jnp.stack(tamp_list, axis=1) * src_mask[None, :, None]         # [B, S, F]
    amps_sh = jnp.concatenate([jnp.swapaxes(a, 1, 2) for a in harmo_list], axis=1)  # [B, SH, F]
    NBp = ((NB + 7) // 8) * 8                                        # pad bands to 8-sublane mult.
    nf_rows = jnp.swapaxes(noise_filter, 1, 2)                       # [B, NB, F]
    nf_rows = jnp.concatenate([nf_rows, jnp.zeros((B, NBp - NB, F), jnp.float32)], axis=1)
    noise_rows = jnp.swapaxes(noise, 1, 2)                           # [B, L, F]

    # ---- small constant tables (no O(F^2*L) TU table anymore) ----
    onesL = np.ones((1, L), dtype=np.float32)
    U = np.kron(np.eye(F, dtype=np.float32), onesL)                  # (F, FL): U[f, f*L+k] = 1
    triU = (np.arange(F)[:, None] < np.arange(F)[None, :]).astype(np.float32)
    TF = (float(L) * triU).astype(np.float32)                        # (F, F) frame-domain prefix

    rows = np.arange(SH)
    E1 = (rows[:, None] // H == np.arange(S)[None, :]).astype(np.float32)     # (SH, S)
    EH = (E1 * (rows % H + 1)[:, None]).astype(np.float32)                    # (SH, S) carries hno
    GRP = (rows[:, None] // H == rows[None, :] // H).astype(np.float32)       # (SH, SH)

    kk = np.arange(NB)[:, None].astype(np.float64)
    nn_ = np.arange(L)[None, :].astype(np.float64)
    wk = np.where((kk == 0) | (kk == NB - 1), 1.0, 2.0)
    cbasis = (wk * np.cos(2.0 * np.pi * kk * nn_ / L)) / L           # exact irfft cosine basis
    win_eff = 0.5 * (1.0 + np.cos(2.0 * np.pi * np.arange(L) / L))   # roll-Hann-roll collapsed
    CB = np.zeros((NBp, FL), np.float32)
    CB[:NB] = np.tile((cbasis * win_eff[None, :]).astype(np.float32), (1, F))

    k_in = np.arange(FL) % L
    CM = (k_in[None, :] >= np.arange(L)[:, None]).astype(np.float32)          # (L, FL) causal mask
    KNO = (k_in + 1).astype(np.float32)[None, :]                              # (1, FL) k + 1

    kernel = functools.partial(
        _ddsp_synth_kernel, block_size=L, sr=float(sampling_rate), add_noise=bool(add_noise))

    # TODO(synk): mark the grid-invariant constant inputs (TF/E1/EH/GRP) with
    # pipeline_mode=pl.Buffered(1) and block the batch axis (Bblk > 1) for further VMEM /
    # grid-overhead savings at realistic sizes.
    out_rows = pl.pallas_call(
        kernel,
        out_shape=jax.ShapeDtypeStruct((B, 1, FL), jnp.float32),
        grid=(B, n_tiles),
        in_specs=[
            pl.BlockSpec((1, S, F), lambda b, t: (b, 0, 0)),      # pitch per source
            pl.BlockSpec((1, S, F), lambda b, t: (b, 0, 0)),      # total amp per source (masked)
            pl.BlockSpec((1, SH, F), lambda b, t: (b, 0, 0)),     # harmonic amplitudes
            pl.BlockSpec((1, NBp, F), lambda b, t: (b, 0, 0)),    # noise-filter rows (padded)
            pl.BlockSpec((1, L, F), lambda b, t: (b, 0, 0)),      # uniform-noise taps x frames
            pl.BlockSpec((F, FLT), lambda b, t: (0, t)),          # U placement column tile
            pl.BlockSpec((F, F), lambda b, t: (0, 0)),            # frame-prefix constant
            pl.BlockSpec((SH, S), lambda b, t: (0, 0)),           # E1 expansion
            pl.BlockSpec((SH, S), lambda b, t: (0, 0)),           # EH expansion (x hno)
            pl.BlockSpec((SH, SH), lambda b, t: (0, 0)),          # group-sum matrix
            pl.BlockSpec((NBp, FLT), lambda b, t: (0, t)),        # windowed cosine basis tile
            pl.BlockSpec((L, FLT), lambda b, t: (0, t)),          # causal in-frame mask tile
            pl.BlockSpec((1, FLT), lambda b, t: (0, t)),          # kno (in-frame index + 1) tile
        ],
        out_specs=pl.BlockSpec((1, 1, FLT), lambda b, t: (b, 0, t)),
        compiler_params=pltpu.CompilerParams(
            dimension_semantics=("parallel", "parallel"),
            vmem_limit_bytes=32 * 1024 * 1024),
    )(pitch_bsf, tamp_bsf, amps_sh, nf_rows, noise_rows,
      jnp.asarray(U), jnp.asarray(TF), jnp.asarray(E1), jnp.asarray(EH), jnp.asarray(GRP),
      jnp.asarray(CB), jnp.asarray(CM), jnp.asarray(KNO))

    out = out_rows.reshape(B, FL, 1)                              # torch output layout [B, N, 1]
    internals = dict(harmo_list=harmo_list, tamp_list=tamp_list,
                     noise_filter=noise_filter, noise=noise)
    return out, internals


# ----------------------------------------------------------------------------
# Pure-numpy (float64) reference mirroring the torch forward semantics
# ----------------------------------------------------------------------------
def reference_forward_np(pitch_list, harmo_list, tamp_list, noise_filter, noise,
                         sr, block_size, n_sources, add_noise):
    pitch_list = np.asarray(pitch_list, np.float64)   # [B,S,F,1]
    B, S, F, _ = pitch_list.shape
    L = int(block_size)
    H = harmo_list[0].shape[-1]

    amps_list = []
    for s in range(S):
        amps = np.asarray(harmo_list[s], np.float64)              # [B,F,H]
        pitch = pitch_list[:, s]                                  # [B,F,1]
        harm = np.arange(1, H + 1, dtype=np.float64)
        mask = (pitch * harm < sr / 2.0).astype(np.float64) + 1e-4
        amps = amps * mask
        amps = amps / amps.sum(-1, keepdims=True)
        amps = amps * np.asarray(tamp_list[s], np.float64)[:, :, None]
        amps_list.append(amps)

    harmonic = np.zeros((B, F * L, 1), np.float64)
    for s in range(n_sources):
        amp_up = np.repeat(amps_list[s], L, axis=1)               # nearest upsample
        pitch_up = np.repeat(pitch_list[:, s], L, axis=1)
        omega = np.cumsum(2.0 * np.pi * pitch_up / sr, axis=1)
        omegas = omega * np.arange(1, H + 1, dtype=np.float64)
        harmonic = harmonic + (np.sin(omegas) * amp_up).sum(-1, keepdims=True)

    # amp_to_impulse_response + fft_convolve
    nf = np.asarray(noise_filter, np.float64)                     # [B,F,NB]
    ir = np.fft.irfft(nf, axis=-1)                                # [B,F,L]
    ir = np.roll(ir, L // 2, axis=-1)
    win = 0.5 - 0.5 * np.cos(2.0 * np.pi * np.arange(L) / L)      # periodic hann
    ir = ir * win
    ir = np.roll(ir, -(L // 2), axis=-1)

    nz = np.asarray(noise, np.float64)                            # [B,F,L]
    sp = np.concatenate([nz, np.zeros_like(nz)], -1)
    kp = np.concatenate([np.zeros_like(ir), ir], -1)
    conv = np.fft.irfft(np.fft.rfft(sp, axis=-1) * np.fft.rfft(kp, axis=-1), axis=-1)
    conv = conv[..., L:]
    noise_sig = conv.reshape(B, -1, 1)

    return harmonic + noise_sig if add_noise else harmonic


# ----------------------------------------------------------------------------
if __name__ == "__main__":
    B = 2              # batch
    max_sources = 2    # S
    H = 8              # n_harmonics
    NB = 9             # n_bands (filter_size = 2*(NB-1) = block_size)
    hidden = 32
    sr = 16000
    L = 16             # block_size
    F = 16             # frames
    N = F * L          # samples

    key = jax.random.PRNGKey(0)
    k_sig, k_pitch, k_loud, k_param, k_noise = jax.random.split(key, 5)
    signal = jax.random.normal(k_sig, (B, N, 1), jnp.float32) * 0.1
    pitch_list = jax.random.uniform(k_pitch, (B, max_sources, F, 1), jnp.float32, 200.0, 1100.0)
    loudness = jax.random.normal(k_loud, (B, F, 1), jnp.float32)
    params = init_params(k_param, hidden, H, NB, max_sources, L)

    out, internals = ddsp_multi_forward(
        signal, pitch_list, loudness, params,
        sampling_rate=sr, block_size=L, n_harmonics=H, n_bands=NB,
        n_sources=max_sources, add_noise=True, noise_key=k_noise,
        fl_tile=128)   # 2 lane tiles x 2 batches -> 4 grid steps, exercises the tiled path
    out = jax.block_until_ready(out)

    ref = reference_forward_np(
        pitch_list, [np.asarray(a) for a in internals["harmo_list"]],
        [np.asarray(t) for t in internals["tamp_list"]],
        internals["noise_filter"], internals["noise"],
        sr=sr, block_size=L, n_sources=max_sources, add_noise=True)

    np.testing.assert_allclose(np.asarray(out), ref, atol=2e-2, rtol=0.0)
    print("KERNEL_OK")
</pallas_src>

<mosaic_0001>
module attributes {stable_mosaic.version = 11 : i64} {
  func.func @_ddsp_synth_kernel(%arg0: i32, %arg1: i32, %arg2: memref<1x2x16xf32, #tpu.memory_space<vmem>>, %arg3: memref<1x2x16xf32, #tpu.memory_space<vmem>>, %arg4: memref<1x16x16xf32, #tpu.memory_space<vmem>>, %arg5: memref<1x16x16xf32, #tpu.memory_space<vmem>>, %arg6: memref<1x16x16xf32, #tpu.memory_space<vmem>>, %arg7: memref<16x128xf32, #tpu.memory_space<vmem>>, %arg8: memref<16x16xf32, #tpu.memory_space<vmem>>, %arg9: memref<16x2xf32, #tpu.memory_space<vmem>>, %arg10: memref<16x2xf32, #tpu.memory_space<vmem>>, %arg11: memref<16x16xf32, #tpu.memory_space<vmem>>, %arg12: memref<16x128xf32, #tpu.memory_space<vmem>>, %arg13: memref<16x128xf32, #tpu.memory_space<vmem>>, %arg14: memref<1x128xf32, #tpu.memory_space<vmem>>, %arg15: memref<1x1x128xf32, #tpu.memory_space<vmem>>) attributes {dimension_semantics = [#tpu.dimension_semantics<parallel>, #tpu.dimension_semantics<parallel>], iteration_bounds = array<i64: 2, 2>, scalar_prefetch = 0 : i64, scratch_operands = 0 : i64, tpu.core_type = #tpu.core_type<tc>, window_params = [{transform_indices = @transform_0, window_bounds = array<i64: 1, 2, 16>}, {transform_indices = @transform_1, window_bounds = array<i64: 1, 2, 16>}, {transform_indices = @transform_2, window_bounds = array<i64: 1, 16, 16>}, {transform_indices = @transform_3, window_bounds = array<i64: 1, 16, 16>}, {transform_indices = @transform_4, window_bounds = array<i64: 1, 16, 16>}, {transform_indices = @transform_5, window_bounds = array<i64: 16, 128>}, {pipeline_mode = #tpu.pipeline_mode<synchronous>, transform_indices = @transform_6, window_bounds = array<i64: 16, 16>}, {pipeline_mode = #tpu.pipeline_mode<synchronous>, transform_indices = @transform_7, window_bounds = array<i64: 16, 2>}, {pipeline_mode = #tpu.pipeline_mode<synchronous>, transform_indices = @transform_8, window_bounds = array<i64: 16, 2>}, {pipeline_mode = #tpu.pipeline_mode<synchronous>, transform_indices = @transform_9, window_bounds = array<i64: 16, 16>}, {transform_indices = @transform_10, window_bounds = array<i64: 16, 128>}, {transform_indices = @transform_11, window_bounds = array<i64: 16, 128>}, {transform_indices = @transform_12, window_bounds = array<i64: 1, 128>}, {transform_indices = @transform_13, window_bounds = array<i64: 1, 1, 128>}]} {
    %c0 = arith.constant 0 : index
    %c0_0 = arith.constant 0 : index
    %c0_1 = arith.constant 0 : index
    %0 = vector.load %arg2[%c0, %c0_0, %c0_1] : memref<1x2x16xf32, #tpu.memory_space<vmem>>, vector<1x2x16xf32>
    %1 = vector.shape_cast %0 : vector<1x2x16xf32> to vector<2x16xf32>
    %c0_2 = arith.constant 0 : index
    %c0_3 = arith.constant 0 : index
    %c0_4 = arith.constant 0 : index
    %2 = vector.load %arg3[%c0_2, %c0_3, %c0_4] : memref<1x2x16xf32, #tpu.memory_space<vmem>>, vector<1x2x16xf32>
    %3 = vector.shape_cast %2 : vector<1x2x16xf32> to vector<2x16xf32>
    %c0_5 = arith.constant 0 : index
    %c0_6 = arith.constant 0 : index
    %c0_7 = arith.constant 0 : index
    %4 = vector.load %arg4[%c0_5, %c0_6, %c0_7] : memref<1x16x16xf32, #tpu.memory_space<vmem>>, vector<1x16x16xf32>
    %5 = vector.shape_cast %4 : vector<1x16x16xf32> to vector<16x16xf32>
    %c0_8 = arith.constant 0 : index
    %c0_9 = arith.constant 0 : index
    %c0_10 = arith.constant 0 : index
    %6 = vector.load %arg5[%c0_8, %c0_9, %c0_10] : memref<1x16x16xf32, #tpu.memory_space<vmem>>, vector<1x16x16xf32>
    %7 = vector.shape_cast %6 : vector<1x16x16xf32> to vector<16x16xf32>
    %c0_11 = arith.constant 0 : index
    %c0_12 = arith.constant 0 : index
    %c0_13 = arith.constant 0 : index
    %8 = vector.load %arg6[%c0_11, %c0_12, %c0_13] : memref<1x16x16xf32, #tpu.memory_space<vmem>>, vector<1x16x16xf32>
    %9 = vector.shape_cast %8 : vector<1x16x16xf32> to vector<16x16xf32>
    %c0_14 = arith.constant 0 : index
    %c0_15 = arith.constant 0 : index
    %10 = vector.load %arg9[%c0_14, %c0_15] : memref<16x2xf32, #tpu.memory_space<vmem>>, vector<16x2xf32>
    %c0_16 = arith.constant 0 : index
    %c0_17 = arith.constant 0 : index
    %11 = vector.load %arg10[%c0_16, %c0_17] : memref<16x2xf32, #tpu.memory_space<vmem>>, vector<16x2xf32>
    %c0_18 = arith.constant 0 : index
    %c0_19 = arith.constant 0 : index
    %12 = vector.load %arg11[%c0_18, %c0_19] : memref<16x16xf32, #tpu.memory_space<vmem>>, vector<16x16xf32>
    %c0_20 = arith.constant 0 : index
    %c0_21 = arith.constant 0 : index
    %13 = vector.load %arg8[%c0_20, %c0_21] : memref<16x16xf32, #tpu.memory_space<vmem>>, vector<16x16xf32>
    %cst = arith.constant 3.9269909E-4 : f32
    %14 = vector.broadcast %cst : f32 to vector<2x16xf32>
    %15 = arith.mulf %14, %1 : vector<2x16xf32>
    %cst_22 = arith.constant dense<0.000000e+00> : vector<16x16xf32>
    %16 = tpu.matmul %11, %15, %cst_22 {dimension_numbers = #tpu.dot_dimension_numbers<[1], [0], [0], [1], [0, 0, 1, 1], [], []>} : vector<16x2xf32>, vector<2x16xf32>, vector<16x16xf32> -> vector<16x16xf32>
    %cst_23 = arith.constant dense<0.000000e+00> : vector<16x16xf32>
    %17 = tpu.matmul %16, %13, %cst_23 {dimension_numbers = #tpu.dot_dimension_numbers<[1], [0], [0], [1], [0, 0, 1, 1], [], []>} : vector<16x16xf32>, vector<16x16xf32>, vector<16x16xf32> -> vector<16x16xf32>
    %cst_24 = arith.constant 0.159154937 : f32
    %18 = vector.broadcast %cst_24 : f32 to vector<16x16xf32>
    %19 = arith.mulf %17, %18 : vector<16x16xf32>
    %20 = math.floor %19 : vector<16x16xf32>
    %cst_25 = arith.constant 6.28318548 : f32
    %21 = vector.broadcast %cst_25 : f32 to vector<16x16xf32>
    %22 = arith.mulf %21, %20 : vector<16x16xf32>
    %23 = arith.subf %17, %22 : vector<16x16xf32>
    %cst_26 = arith.constant 3.14159274 : f32
    %24 = vector.broadcast %cst_26 : f32 to vector<16x16xf32>
    %25 = arith.cmpf olt, %16, %24 : vector<16x16xf32>
    %26 = arith.extui %25 : vector<16x16xi1> to vector<16x16xi32>
    %27 = arith.sitofp %26 : vector<16x16xi32> to vector<16x16xf32>
    %cst_27 = arith.constant 9.99999974E-5 : f32
    %28 = vector.broadcast %cst_27 : f32 to vector<16x16xf32>
    %29 = arith.addf %27, %28 : vector<16x16xf32>
    %30 = arith.mulf %5, %29 : vector<16x16xf32>
    %cst_28 = arith.constant dense<0.000000e+00> : vector<16x16xf32>
    %31 = tpu.matmul %12, %30, %cst_28 {dimension_numbers = #tpu.dot_dimension_numbers<[1], [0], [0], [1], [0, 0, 1, 1], [], []>} : vector<16x16xf32>, vector<16x16xf32>, vector<16x16xf32> -> vector<16x16xf32>
    %32 = tpu.reciprocal %31 {approx = true} : vector<16x16xf32> -> vector<16x16xf32>
    %33 = arith.mulf %30, %32 : vector<16x16xf32>
    %cst_29 = arith.constant dense<0.000000e+00> : vector<16x16xf32>
    %34 = tpu.matmul %10, %3, %cst_29 {dimension_numbers = #tpu.dot_dimension_numbers<[1], [0], [0], [1], [0, 0, 1, 1], [], []>} : vector<16x2xf32>, vector<2x16xf32>, vector<16x16xf32> -> vector<16x16xf32>
    %35 = arith.mulf %33, %34 : vector<16x16xf32>
    %36 = tpu.concatenate %16, %23, %35, %7, %9 in 0 : vector<16x16xf32>, vector<16x16xf32>, vector<16x16xf32>, vector<16x16xf32>, vector<16x16xf32> -> vector<80x16xf32>
    %c0_30 = arith.constant 0 : index
    %c0_31 = arith.constant 0 : index
    %37 = vector.load %arg7[%c0_30, %c0_31] : memref<16x128xf32, #tpu.memory_space<vmem>>, vector<16x128xf32>
    %cst_32 = arith.constant dense<0.000000e+00> : vector<80x128xf32>
    %38 = tpu.matmul %36, %37, %cst_32 {dimension_numbers = #tpu.dot_dimension_numbers<[1], [0], [0], [1], [0, 0, 1, 1], [], []>} : vector<80x16xf32>, vector<16x128xf32>, vector<80x128xf32> -> vector<80x128xf32>
    %39 = vector.extract_strided_slice %38 {offsets = [0, 0], sizes = [16, 128], strides = [1, 1]} : vector<80x128xf32> to vector<16x128xf32>
    %40 = vector.extract_strided_slice %38 {offsets = [16, 0], sizes = [16, 128], strides = [1, 1]} : vector<80x128xf32> to vector<16x128xf32>
    %41 = vector.extract_strided_slice %38 {offsets = [32, 0], sizes = [16, 128], strides = [1, 1]} : vector<80x128xf32> to vector<16x128xf32>
    %42 = vector.extract_strided_slice %38 {offsets = [48, 0], sizes = [16, 128], strides = [1, 1]} : vector<80x128xf32> to vector<16x128xf32>
    %43 = vector.extract_strided_slice %38 {offsets = [64, 0], sizes = [16, 128], strides = [1, 1]} : vector<80x128xf32> to vector<16x128xf32>
    %c0_33 = arith.constant 0 : index
    %c0_34 = arith.constant 0 : index
    %44 = vector.load %arg14[%c0_33, %c0_34] : memref<1x128xf32, #tpu.memory_space<vmem>>, vector<1x128xf32>
    %45 = vector.broadcast %44 : vector<1x128xf32> to vector<16x128xf32>
    %46 = arith.mulf %45, %39 : vector<16x128xf32>
    %47 = arith.addf %40, %46 : vector<16x128xf32>
    %48 = math.sin %47 : vector<16x128xf32>
    %49 = arith.mulf %48, %41 : vector<16x128xf32>
    %cst_35 = arith.constant dense<0.000000e+00> : vector<128xf32>
    %50 = vector.multi_reduction <add>, %49, %cst_35 [0] : vector<16x128xf32> to vector<128xf32>
    %51 = vector.shape_cast %50 : vector<128xf32> to vector<1x128xf32>
    %c0_36 = arith.constant 0 : index
    %c0_37 = arith.constant 0 : index
    %52 = vector.load %arg12[%c0_36, %c0_37] : memref<16x128xf32, #tpu.memory_space<vmem>>, vector<16x128xf32>
    %53 = arith.mulf %42, %52 : vector<16x128xf32>
    %cst_38 = arith.constant dense<0.000000e+00> : vector<128xf32>
    %54 = vector.multi_reduction <add>, %53, %cst_38 [0] : vector<16x128xf32> to vector<128xf32>
    %55 = vector.shape_cast %54 : vector<128xf32> to vector<1x128xf32>
    %c1_i32 = arith.constant 1 : i32
    %56 = tpu.dynamic_rotate %55 by %c1_i32 dim 1 : vector<1x128xf32>, i32 -> vector<1x128xf32>
    %c2_i32 = arith.constant 2 : i32
    %57 = tpu.dynamic_rotate %55 by %c2_i32 dim 1 : vector<1x128xf32>, i32 -> vector<1x128xf32>
    %c3_i32 = arith.constant 3 : i32
    %58 = tpu.dynamic_rotate %55 by %c3_i32 dim 1 : vector<1x128xf32>, i32 -> vector<1x128xf32>
    %c4_i32 = arith.constant 4 : i32
    %59 = tpu.dynamic_rotate %55 by %c4_i32 dim 1 : vector<1x128xf32>, i32 -> vector<1x128xf32>
    %c5_i32 = arith.constant 5 : i32
    %60 = tpu.dynamic_rotate %55 by %c5_i32 dim 1 : vector<1x128xf32>, i32 -> vector<1x128xf32>
    %c6_i32 = arith.constant 6 : i32
    %61 = tpu.dynamic_rotate %55 by %c6_i32 dim 1 : vector<1x128xf32>, i32 -> vector<1x128xf32>
    %c7_i32 = arith.constant 7 : i32
    %62 = tpu.dynamic_rotate %55 by %c7_i32 dim 1 : vector<1x128xf32>, i32 -> vector<1x128xf32>
    %c8_i32 = arith.constant 8 : i32
    %63 = tpu.dynamic_rotate %55 by %c8_i32 dim 1 : vector<1x128xf32>, i32 -> vector<1x128xf32>
    %c9_i32 = arith.constant 9 : i32
    %64 = tpu.dynamic_rotate %55 by %c9_i32 dim 1 : vector<1x128xf32>, i32 -> vector<1x128xf32>
    %c10_i32 = arith.constant 10 : i32
    %65 = tpu.dynamic_rotate %55 by %c10_i32 dim 1 : vector<1x128xf32>, i32 -> vector<1x128xf32>
    %c11_i32 = arith.constant 11 : i32
    %66 = tpu.dynamic_rotate %55 by %c11_i32 dim 1 : vector<1x128xf32>, i32 -> vector<1x128xf32>
    %c12_i32 = arith.constant 12 : i32
    %67 = tpu.dynamic_rotate %55 by %c12_i32 dim 1 : vector<1x128xf32>, i32 -> vector<1x128xf32>
    %c13_i32 = arith.constant 13 : i32
    %68 = tpu.dynamic_rotate %55 by %c13_i32 dim 1 : vector<1x128xf32>, i32 -> vector<1x128xf32>
    %c14_i32 = arith.constant 14 : i32
    %69 = tpu.dynamic_rotate %55 by %c14_i32 dim 1 : vector<1x128xf32>, i32 -> vector<1x128xf32>
    %c15_i32 = arith.constant 15 : i32
    %70 = tpu.dynamic_rotate %55 by %c15_i32 dim 1 : vector<1x128xf32>, i32 -> vector<1x128xf32>
    %71 = tpu.concatenate %55, %56, %57, %58, %59, %60, %61, %62, %63, %64, %65, %66, %67, %68, %69, %70 in 0 : vector<1x128xf32>, vector<1x128xf32>, vector<1x128xf32>, vector<1x128xf32>, vector<1x128xf32>, vector<1x128xf32>, vector<1x128xf32>, vector<1x128xf32>, vector<1x128xf32>, vector<1x128xf32>, vector<1x128xf32>, vector<1x128xf32>, vector<1x128xf32>, vector<1x128xf32>, vector<1x128xf32>, vector<1x128xf32> -> vector<16x128xf32>
    %c0_39 = arith.constant 0 : index
    %c0_40 = arith.constant 0 : index
    %72 = vector.load %arg13[%c0_39, %c0_40] : memref<16x128xf32, #tpu.memory_space<vmem>>, vector<16x128xf32>
    %73 = arith.mulf %71, %72 : vector<16x128xf32>
    %74 = arith.mulf %73, %43 : vector<16x128xf32>
    %cst_41 = arith.constant dense<0.000000e+00> : vector<128xf32>
    %75 = vector.multi_reduction <add>, %74, %cst_41 [0] : vector<16x128xf32> to vector<128xf32>
    %76 = vector.shape_cast %75 : vector<128xf32> to vector<1x128xf32>
    %77 = arith.addf %51, %76 : vector<1x128xf32>
    %c0_42 = arith.constant 0 : index
    %c0_43 = arith.constant 0 : index
    %c0_44 = arith.constant 0 : index
    %78 = vector.load %arg15[%c0_42, %c0_43, %c0_44] : memref<1x1x128xf32, #tpu.memory_space<vmem>>, vector<1x1x128xf32>
    %79 = vector.shape_cast %78 : vector<1x1x128xf32> to vector<1x128xf32>
    %80 = vector.shape_cast %77 : vector<1x128xf32> to vector<1x1x128xf32>
    tpu.vector_store %arg15[%c0_42, %c0_43, %c0_44], %80 {strides = array<i32>} : memref<1x1x128xf32, #tpu.memory_space<vmem>>, vector<1x1x128xf32>,
    return
  }
  func.func @transform_0(%arg0: i32, %arg1: i32) -> (i32, i32, i32) {
    %c0_i32 = arith.constant 0 : i32
    %c0_i32_0 = arith.constant 0 : i32
    %c0_i32_1 = arith.constant 0 : i32
    return %arg0, %c0_i32, %c0_i32_0 : i32, i32, i32
  }
  func.func @transform_1(%arg0: i32, %arg1: i32) -> (i32, i32, i32) {
    %c0_i32 = arith.constant 0 : i32
    %c0_i32_0 = arith.constant 0 : i32
    %c0_i32_1 = arith.constant 0 : i32
    return %arg0, %c0_i32, %c0_i32_0 : i32, i32, i32
  }
  func.func @transform_2(%arg0: i32, %arg1: i32) -> (i32, i32, i32) {
    %c0_i32 = arith.constant 0 : i32
    %c0_i32_0 = arith.constant 0 : i32
    %c0_i32_1 = arith.constant 0 : i32
    return %arg0, %c0_i32, %c0_i32_0 : i32, i32, i32
  }
  func.func @transform_3(%arg0: i32, %arg1: i32) -> (i32, i32, i32) {
    %c0_i32 = arith.constant 0 : i32
    %c0_i32_0 = arith.constant 0 : i32
    %c0_i32_1 = arith.constant 0 : i32
    return %arg0, %c0_i32, %c0_i32_0 : i32, i32, i32
  }
  func.func @transform_4(%arg0: i32, %arg1: i32) -> (i32, i32, i32) {
    %c0_i32 = arith.constant 0 : i32
    %c0_i32_0 = arith.constant 0 : i32
    %c0_i32_1 = arith.constant 0 : i32
    return %arg0, %c0_i32, %c0_i32_0 : i32, i32, i32
  }
  func.func @transform_5(%arg0: i32, %arg1: i32) -> (i32, i32) {
    %c0_i32 = arith.constant 0 : i32
    %c0_i32_0 = arith.constant 0 : i32
    return %c0_i32, %arg1 : i32, i32
  }
  func.func @transform_6(%arg0: i32, %arg1: i32) -> (i32, i32) {
    %c0_i32 = arith.constant 0 : i32
    %c0_i32_0 = arith.constant 0 : i32
    %c0_i32_1 = arith.constant 0 : i32
    return %c0_i32, %c0_i32_0 : i32, i32
  }
  func.func @transform_7(%arg0: i32, %arg1: i32) -> (i32, i32) {
    %c0_i32 = arith.constant 0 : i32
    %c0_i32_0 = arith.constant 0 : i32
    %c0_i32_1 = arith.constant 0 : i32
    return %c0_i32, %c0_i32_0 : i32, i32
  }
  func.func @transform_8(%arg0: i32, %arg1: i32) -> (i32, i32) {
    %c0_i32 = arith.constant 0 : i32
    %c0_i32_0 = arith.constant 0 : i32
    %c0_i32_1 = arith.constant 0 : i32
    return %c0_i32, %c0_i32_0 : i32, i32
  }
  func.func @transform_9(%arg0: i32, %arg1: i32) -> (i32, i32) {
    %c0_i32 = arith.constant 0 : i32
    %c0_i32_0 = arith.constant 0 : i32
    %c0_i32_1 = arith.constant 0 : i32
    return %c0_i32, %c0_i32_0 : i32, i32
  }
  func.func @transform_10(%arg0: i32, %arg1: i32) -> (i32, i32) {
    %c0_i32 = arith.constant 0 : i32
    %c0_i32_0 = arith.constant 0 : i32
    return %c0_i32, %arg1 : i32, i32
  }
  func.func @transform_11(%arg0: i32, %arg1: i32) -> (i32, i32) {
    %c0_i32 = arith.constant 0 : i32
    %c0_i32_0 = arith.constant 0 : i32
    return %c0_i32, %arg1 : i32, i32
  }
  func.func @transform_12(%arg0: i32, %arg1: i32) -> (i32, i32) {
    %c0_i32 = arith.constant 0 : i32
    %c0_i32_0 = arith.constant 0 : i32
    return %c0_i32, %arg1 : i32, i32
  }
  func.func @transform_13(%arg0: i32, %arg1: i32) -> (i32, i32, i32) {
    %c0_i32 = arith.constant 0 : i32
    %c0_i32_0 = arith.constant 0 : i32
    return %arg0, %c0_i32, %arg1 : i32, i32, i32
  }
}

</mosaic_0001>

<bundles_post_ra>
// kernel: tpu_custom_call.1
= control target key start
LH: loop header
LB: loop body
LE: loop exit
PB: predicated region body
PF: predicated region fallthrough
CT: control target
= control target key end

     0   :  { %s3473_s0 = inlined_call_operand.hbm [shape: f32[2,2,16], index: 0, kind: input, shape index: {}]   ;;  %s3474_s1 = inlined_call_operand.hbm [shape: f32[2,2,16], index: 1, kind: input, shape index: {}]   ;;  %s3475_s2 = inlined_call_operand.vmem [shape: f32[2,16,16], index: 2, kind: input, shape index: {}]   ;;  %s3476_s3 = inlined_call_operand.hbm [shape: f32[2,16,16], index: 3, kind: input, shape index: {}]   ;;  %s3477_s4 = inlined_call_operand.hbm [shape: f32[2,16,16], index: 4, kind: input, shape index: {}]   ;;  %s3478_s5 = inlined_call_operand.hbm [shape: f32[16,256], index: 5, kind: input, shape index: {}]   ;;  %s3479_s6 = inlined_call_operand.hbm [shape: f32[16,16], index: 6, kind: input, shape index: {}]   ;;  %s3480_s7 = inlined_call_operand.vmem [shape: f32[16,2], index: 7, kind: input, shape index: {}]   ;;  %s3481_s8 = inlined_call_operand.vmem [shape: f32[16,2], index: 8, kind: input, shape index: {}]   ;;  %s3482_s9 = inlined_call_operand.hbm [shape: f32[16,16], index: 9, kind: input, shape index: {}]   ;;  %s3483_s10 = inlined_call_operand.vmem [shape: f32[16,256], index: 10, kind: input, shape index: {}]   ;;  %s3484_s11 = inlined_call_operand.hbm [shape: f32[16,256], index: 11, kind: input, shape index: {}]   ;;  %s3485_s12 = inlined_call_operand.vmem [shape: f32[1,256], index: 12, kind: input, shape index: {}]   ;;  %s3486_s13 = inlined_call_operand.hbm [shape: f32[2,1,256], index: 13, kind: output, shape index: {}]  }
   0x1   :  { %3523 = sst [smem:[#allocation42_spill]] %s3474_s1 }
   0x2   :  { %3524 = sst [smem:[#allocation43_spill]] %s3475_s2 }
   0x3   :  { %3525 = sst [smem:[#allocation44_spill]] %s3477_s4 }
   0x4   :  { %3526 = sst [smem:[#allocation45_spill]] %s3479_s6 }
   0x5   :  { %3527 = sst [smem:[#allocation46_spill]] %s3480_s7 }
   0x6   :  { %3528 = sst [smem:[#allocation47_spill]] %s3481_s8 }
   0x7   :  { %3529 = sst [smem:[#allocation48_spill]] %s3482_s9 }
   0x8   :  { %3530 = sst [smem:[#allocation49_spill]] %s3485_s12 }
   0x9   :  { %3531 = sst [smem:[#allocation50_spill]] %s3486_s13 }
   0xa   :  { %18 = vsyncpa [#allocation3], 0 }
   0xb   :  { %20 = vsyncpa [#allocation3 + $0x1], 0 }
   0xc   :  { %21 = vsyncpa [#allocation6], 0 }
   0xd   :  { %23 = vsyncpa [#allocation6 + $0x1], 0 }
   0xe   :  { %24 = vsyncpa [#allocation9], 0 }
   0xf   :  { %26 = vsyncpa [#allocation9 + $0x1], 0 }
  0x10   :  { %27 = vsyncpa [#allocation12], 0 }
  0x11   :  { %28 = vsyncpa [#allocation16], 0 }
  0x12   :  { %30 = vsyncpa [#allocation16 + $0x1], 0 }
  0x13   :  { %31 = vsyncpa [#allocation4], 0 }
  0x14   :  { %33 = vsyncpa [#allocation4 + $0x1], 0  ;;  %s2753_s25 = smov 0   ;;  %s2755_s26 = smov 0  }
  0x15   :  { %s2757_s27 = smov 0   ;;  %s2759_s28 = smov 0  }
  0x16   :  { %s2761_s29 = smov 0   ;;  %s2763_s30 = smov 0  }
  0x17   :  { %s2765_s14 = smov 0   ;;  %s2767_s15 = smov 0  }
  0x18   :  { %s2769_s16 = smov 0   ;;  %s2771_s17 = smov 0  }
  0x19   :  { %s2773_s18 = smov 0   ;;  %s2775_s19 = smov 0  }
  0x1a   :  { %s2777_s20 = smov 0   ;;  %s2779_s21 = smov 0  }
  0x1b LB: > { %3532 = sst [smem:[#allocation25_spill]] %s2593_s25  ;;  %s2822_s22 = sadd.s32 4294967295, %s2645_s21   ;;  %s2645_s21 = sphi %s2779_s21, %s39_s21   ;;  %s2641_s20 = sphi %s2777_s20, %s3618_s20   ;;  %s2637_s19 = sphi %s2775_s19, %s3617_s19   ;;  %s2633_s18 = sphi %s2773_s18, %s3616_s18   ;;  %s2629_s17 = sphi %s2771_s17, %s3615_s17   ;;  %s2625_s16 = sphi %s2769_s16, %s3614_s16   ;;  %s2621_s15 = sphi %s2767_s15, %s3613_s15   ;;  %s2617_s14 = sphi %s2765_s14, %s3606_s14   ;;  %s2613_s30 = sphi %s2763_s30, %s3612_s30   ;;  %s2609_s29 = sphi %s2761_s29, %s3611_s29   ;;  %s2605_s28 = sphi %s2759_s28, %s3604_s28   ;;  %s2601_s27 = sphi %s2757_s27, %s3603_s27   ;;  %s2597_s26 = sphi %s2755_s26, %s3602_s26   ;;  %s2593_s25 = sphi %s2753_s25, %s3601_s25  }
  0x1c   : > { %3533 = sst [smem:[#allocation26_spill]] %s2597_s26  ;;  %s48_s24 = sadd.s32 1, %s2637_s19 }
  0x1d   : > { %3534 = sst [smem:[#allocation27_spill]] %s2601_s27  ;;  %s51_s13 = sadd.s32 1, %s2641_s20 }
  0x1e   : > { %3535 = sst [smem:[#allocation28_spill]] %s2609_s29  ;;  %p49_p0 = scmp.ge.s32.totalorder %s48_s24, 2 }
  0x1f   : > { %3536 = sst [smem:[#allocation29_spill]] %s2621_s15  ;;  %s58_s12 = sadd.s32 1, %s2625_s16 }
  0x20   : > { %3537 = sst [smem:[#allocation30_spill]] %s2629_s17  ;;  %p65_p1 = scmp.ne.s32.totalorder %s2625_s16, %s2621_s15 }
  0x21   : > { %3538 = sst [smem:[#allocation31_spill]] %s2633_s18  ;;  %p66_p2 = scmp.eq.s32.totalorder %s2645_s21, 0 }
  0x22   : > { %3539 = sst [smem:[#allocation32_spill]] %s2822_s22  ;;  %s3620_s24 = smov (%p49_p0, %s48_s24), 0 }
  0x23   : > { %3540 = sst [smem:[#allocation33_spill]] %s3620_s24  ;;  %s3622_s13 = smov (!%p49_p0, %s51_s13), %s2641_s20 }
  0x24   : > { %p2836_p3 = por %p66_p2, %p65_p1  ;;  %p71_p4 = scmp.ne.s32.totalorder %s2621_s15, %s2617_s14 }
  0x25   : > { %p53_p5 = scmp.ge.s32.totalorder %s3622_s13, 2  ;;  %p3497_p6 = scmp.eq.s32.totalorder %s2822_s22, 0 }
  0x26   : > { %s3541_s23 = scalar_select %p2836_p3, 1, 0 }
  0x27   : > { %s185_s17 = ssub.s32 %s2637_s19, %s3620_s24  ;;  %s188_s7 = sadd.s32 1, %s2613_s30 }
  0x28   : > { %s3624_s13 = smov (%p53_p5, %s3622_s13), 0  ;;  %p2849_p7 = por %p3497_p6, %p71_p4 }
  0x29   : > { %3542 = sst [smem:[#allocation34_spill]] %s3624_s13  ;;  %p186_p8 = scmp.eq.s32.totalorder %s185_s17, 0 }
  0x2a   : > { %s3543_s2 = scalar_select %p2849_p7, 1, 0 }
  0x2b   : > { %s55_s14 = ssub.s32 %s2641_s20, %s3624_s13  ;;  %p195_p9 = scmp.ne.s32.totalorder %s2613_s30, %s2609_s29 }
  0x2c   : > { %3544 = sst [smem:[#allocation35_spill]] %s3543_s2  ;;  %p56_p10 = scmp.eq.s32.totalorder %s55_s14, 0 }
  0x2d   : > { %p201_p11 = scmp.ne.s32.totalorder %s2609_s29, %s2605_s28  ;;  %p2867_p12 = por %p195_p9, %p66_p2 }
  0x2e   : > { %s2860_s24 = scalar_select %p186_p8, %s2613_s30, %s188_s7  }
  0x2f   : > { %s2863_s18 = scalar_select %p56_p10, %s2625_s16, %s58_s12  }
  0x30   : > { %3545 = sst [smem:[#allocation36_spill]] %s2860_s24  ;;  %p2873_p13 = por %p201_p11, %p3497_p6 }
  0x31   : > { %3546 = sst [smem:[#allocation37_spill]] %s2863_s18  ;;  %s375_s13 = sor.u32 %s185_s17, %s55_s14 }
  0x32   : > { %s3547_s8 = scalar_select %p2867_p12, 1, 0 }
  0x33   : > { %s3548_s2 = scalar_select %p2873_p13, 1, 0 }
  0x34   : > { %s378_s15 = sadd.s32 1, %s2601_s27  ;;  %p376_p0 = scmp.eq.s32.totalorder %s375_s13, 0 }
  0x35   : > { %3549 = sst [smem:[#allocation38_spill]] %s3548_s2  ;;  %p388_p1 = scmp.ne.s32.totalorder %s2601_s27, %s2597_s26 }
  0x36   : > { %p389_p4 = scmp.eq.s32.totalorder %s2822_s22, 3  ;;  %p394_p5 = scmp.ne.s32.totalorder %s2597_s26, %s2593_s25 }
  0x37   : > { %s2884_s7 = scalar_select %p376_p0, %s2601_s27, %s378_s15  }
  0x38   : > { %p2886_p8 = por %p389_p4, %p388_p1  ;;  %s3553_s28 = sadd.s32 4294967294, %s2645_s21  }
  0x39   : > { %3550 = sst [smem:[#allocation39_spill]] %s2884_s7  ;;  %p395_p2 = scmp.eq.s32.totalorder %s3553_s28, 3 }
  0x3a   : > { %s3551_s12 = scalar_select %p2886_p8, 1, 0 }
  0x3b   : > { %p1903_p9 = scmp.ge.s32.totalorder %s2645_s21, 1  ;;  %p402_p10 = scmp.lt.s32.totalorder %s2645_s21, 5 }
  0x3c   : > { %3552 = sst [smem:[#allocation40_spill]] %s3551_s12  ;;  %p2894_p11 = por %p395_p2, %p394_p5 }
  0x3d   : > { %p2898_p6 = pnand %p1903_p9, %p402_p10  ;;  %s2647_s13 = smov [#allocation11]  }
  0x3e   : > { %s3554_s18 = scalar_select %p2894_p11, 1, 0 }
  0x3f   : > { %s3556_s17 = scalar_select %p2898_p6, 1, 0 }
  0x40   : > { %3555 = sst [smem:[#allocation41_spill]] %s3554_s18  ;;  %s414_s15 = sshll.u32 %s2647_s13, 4  ;;  %s415_s15 = int_to_ptr.vmem [resolvable:$true] %s414_s15 }
  0x41   : > { %p2086_p0 = pneg %p2898_p6  ;;  %p3557_p1 = scmp.eq.s32.totalorder %s2822_s22, 0 }
  0x42   : > { %s2648_s28 = smov [#allocation13]   ;;  %s3559_s6 = sld [smem:[#allocation45_spill]] }
  0x43   : > { %p2906_p4 = pnand %p2086_p0, %p3557_p1  ;;  %s433_s24 = sshll.u32 %s2648_s28, 4  ;;  %s2910_s24 = int_to_ptr.vmem [resolvable:$true] %s433_s24 }
  0x45   : > { %p2257_p2 = pneg %p2906_p4 }
  0x48   : > { %s2255_s18 = scalar_lea.hbm %s3559_s6, 256 }
  0x49   : > { %p2256_p5 = scmp.ne.s32.totalorder %s3559_s6, %s2255_s18  ;;  %p2262_p0 = scmp.lt.u32.totalorder %s2255_s18, %s3559_s6 }
  0x4b   : > { %p2258_p9 = pnand %p2257_p2, %p2256_p5 }
  0x4d   : > { %p2259_p10 = pneg %p2258_p9 }
  0x4f   : > { %p2264_p1 = pnand %p2262_p0, %p2259_p10 }
  0x51   : > { %2267 = shalt.err (!%p2264_p1)
}
  0x52   : > { %s2268_s28 = scalar_lea.vmem %s415_s15, 256  ;;  %p2276_p7 = scmp.lt.s32.totalorder %s415_s15, %s415_s15 }
  0x53   : > { %p2269_p11 = scmp.ne.s32.totalorder %s415_s15, %s2268_s28  ;;  %p2277_p6 = scmp.lt.s32.totalorder %s2268_s28, %s2268_s28 }
  0x55   : > { %p2271_p8 = pnand %p2269_p11, %p2257_p2  ;;  %p2278_p12 = por %p2277_p6, %p2276_p7 }
  0x57   : > { %p2272_p13 = pneg %p2271_p8 }
  0x59   : > { %p2279_p3 = pnand %p2278_p12, %p2272_p13 }
  0x5b   : > { %2282 = shalt.err (!%p2279_p3)
}
  0x5c   : > { %s2649_s25 = smov 128   ;;  %s2650_s27 = smov 8  }
  0x5d   : > { %2089 = dma.hbm_to_vmem [thread:$0]  (!%p2906_p4), %s3559_s6, 256, %s415_s15, [#allocation12], %s2649_s25, %s2649_s25, %s2650_s27  }
  0x5e   : > { %s3560_s9 = sld [smem:[#allocation48_spill]] }
  0x64   : > { %s2283_s13 = scalar_lea.hbm %s3560_s9, 256 }
  0x65   : > { %p2284_p8 = scmp.ne.s32.totalorder %s3560_s9, %s2283_s13  ;;  %p2290_p7 = scmp.lt.u32.totalorder %s2283_s13, %s3560_s9 }
  0x67   : > { %p2286_p3 = pnand %p2284_p8, %p2257_p2 }
  0x69   : > { %p2287_p6 = pneg %p2286_p3 }
  0x6b   : > { %p2292_p12 = pnand %p2290_p7, %p2287_p6 }
  0x6d   : > { %2295 = shalt.err (!%p2292_p12)
}
  0x6e   : > { %s2296_s15 = scalar_lea.vmem %s2910_s24, 256  ;;  %p2304_p9 = scmp.lt.s32.totalorder %s2910_s24, %s2910_s24 }
  0x6f   : > { %p2297_p13 = scmp.ne.s32.totalorder %s2910_s24, %s2296_s15  ;;  %p2305_p10 = scmp.lt.s32.totalorder %s2296_s15, %s2296_s15 }
  0x71   : > { %p2299_p11 = pnand %p2297_p13, %p2257_p2  ;;  %p2306_p0 = por %p2305_p10, %p2304_p9 }
  0x73   : > { %p2300_p5 = pneg %p2299_p11 }
  0x75   : > { %p2307_p1 = pnand %p2306_p0, %p2300_p5 }
  0x77   : > { %2310 = shalt.err (!%p2307_p1)
}
  0x78   : > { %2092 = dma.hbm_to_vmem [thread:$0]  (!%p2906_p4), %s3560_s9, 256, %s2910_s24, [#allocation12], %s2649_s25, %s2649_s25, %s2650_s27  }
  0x79   : > { %p1906_p8 = scmp.ge.s32.totalorder %s2645_s21, 4 }
  0x7a   : > { %s2961_s22 = sand.u32 (!%p1906_p8), 1, %s2625_s16   ;;  %s3517_s26 = sshll.u32 (!%p1906_p8), %s2641_s20, 5 }
  0x7b   : > { %443 = sbr.rel (%p1906_p8) target bundleno = 288 (0x120), region = 32  ;;  %s3516_s14 = sshll.u32 (!%p1906_p8), %s2961_s22, 1 }
  0x7c   : > { %s3518_s18 = sand.u32 (!%p1906_p8), 1, %s2645_s21   ;;  %s3561_s1 = sld [smem:[#allocation42_spill]] (!%p1906_p8) }
  0x7d   : > { %s469_s25 = scalar_lea.vmem (!%p1906_p8), [#allocation5], %s3516_s14  ;;  %s2977_s13 = scalar_lea.sflag (!%p1906_p8), [#allocation6], %s3518_s18 }
  0x7e   : > { %s476_s27 = sshll.u32 (!%p1906_p8), %s469_s25, 4  ;;  %p3562_p2 = scmp.ne.s32.totalorder (!%p1906_p8), %s3541_s23, 0  ;;  %s477_s27 = int_to_ptr.vmem [resolvable:$true] %s476_s27 }
  0x82   : > { %s2971_s24 = scalar_lea.hbm %s3561_s1, %s3517_s26  ;;  %s2315_s29 = scalar_lea.hbm %s3561_s1, 64 }
  0x83   : > { %s2311_s28 = scalar_lea.hbm %s2971_s24, 32  ;;  %p2316_p7 = scmp.lt.u32.totalorder %s2971_s24, %s3561_s1 }
  0x84   : > { %p2312_p4 = scmp.ne.s32.totalorder %s2971_s24, %s2311_s28  ;;  %p2317_p12 = scmp.lt.u32.totalorder %s2315_s29, %s2311_s28 }
  0x85   : > { %p2319_p11 = scmp.lt.u32.totalorder %s2311_s28, %s2971_s24 }
  0x86   : > { %p2313_p3 = pnand %p2312_p4, %p3562_p2  ;;  %p2318_p13 = por %p2317_p12, %p2316_p7 }
  0x88   : > { %p2314_p6 = pneg %p2313_p3  ;;  %p2320_p5 = por %p2319_p11, %p2318_p13 }
  0x8a   : > { %p2321_p9 = pnand %p2320_p5, %p2314_p6 }
  0x8c   : > { %2324 = shalt.err (!%p2321_p9)
}
  0x8d   : > { %s2325_s25 = scalar_lea.vmem %s477_s27, 32  ;;  %s2651_s14 = smov [#allocation5]  }
  0x8e   : > { %p2326_p10 = scmp.ne.s32.totalorder %s477_s27, %s2325_s25  ;;  %s2329_s26 = sshll.u32 %s2651_s14, 4  ;;  %s2330_s26 = int_to_ptr.vmem [resolvable:$false] %s2329_s26 }
  0x8f   : > { %s2331_s15 = scalar_lea.vmem %s2330_s26, 64  ;;  %p2332_p8 = scmp.lt.s32.totalorder %s477_s27, %s2330_s26 }
  0x90   : > { %p2327_p0 = pnand %p2326_p10, %p3562_p2  ;;  %p2333_p4 = scmp.lt.s32.totalorder %s2331_s15, %s2325_s25 }
  0x92   : > { %p2328_p1 = pneg %p2327_p0  ;;  %p2334_p3 = por %p2333_p4, %p2332_p8 }
  0x94   : > { %p2335_p7 = pnand %p2334_p3, %p2328_p1 }
  0x96   : > { %2338 = shalt.err (!%p2335_p7)
}
  0x97   : > { %2069 = dma.hbm_to_vmem [thread:$0]  (%p3562_p2), %s2971_s24, 32, %s477_s27, %s2977_s13  }
  0x98   : > { %s1911_s28 = sshll.u32 %s2961_s22, 4  ;;  %s1970_s2 = sshll.u32 %s2641_s20, 8 }
  0x99   : > { %s3002_s7 = scalar_lea.hbm %s3476_s3, %s1970_s2  ;;  %s3004_s26 = scalar_lea.vmem [#allocation7], %s1911_s28 }
  0x9a   : > { %s3563_s4 = sld [smem:[#allocation44_spill]]  ;;  %s516_s24 = scalar_lea.vmem [#allocation8], %s1911_s28 }
  0x9b   : > { %s523_s27 = sshll.u32 %s516_s24, 4  ;;  %s3564_s29 = sand.u32 1, %s2645_s21   ;;  %s3012_s27 = int_to_ptr.vmem [resolvable:$true] %s523_s27 }
  0x9c   : > { %s3016_s14 = scalar_lea.sflag [#allocation9], %s3564_s29 }
  0xa0   : > { %s3010_s18 = scalar_lea.hbm %s3563_s4, %s1970_s2  ;;  %s2343_s2 = scalar_lea.hbm %s3563_s4, 512 }
  0xa1   : > { %s2339_s1 = scalar_lea.hbm %s3010_s18, 256  ;;  %p2344_p11 = scmp.lt.u32.totalorder %s3010_s18, %s3563_s4 }
  0xa2   : > { %p2340_p6 = scmp.ne.s32.totalorder %s3010_s18, %s2339_s1  ;;  %p2345_p5 = scmp.lt.u32.totalorder %s2343_s2, %s2339_s1 }
  0xa3   : > { %p2347_p10 = scmp.lt.u32.totalorder %s2339_s1, %s3010_s18 }
  0xa4   : > { %p2341_p12 = pnand %p2340_p6, %p3562_p2  ;;  %p2346_p9 = por %p2345_p5, %p2344_p11 }
  0xa6   : > { %p2342_p13 = pneg %p2341_p12  ;;  %p2348_p0 = por %p2347_p10, %p2346_p9 }
  0xa8   : > { %p2349_p1 = pnand %p2348_p0, %p2342_p13 }
  0xaa   : > { %2352 = shalt.err (!%p2349_p1)
}
  0xab   : > { %s2353_s28 = scalar_lea.vmem %s3012_s27, 256  ;;  %s2652_s12 = smov [#allocation8]  }
  0xac   : > { %p2354_p8 = scmp.ne.s32.totalorder %s3012_s27, %s2353_s28  ;;  %s2357_s24 = sshll.u32 %s2652_s12, 4  ;;  %s2358_s24 = int_to_ptr.vmem [resolvable:$false] %s2357_s24 }
  0xad   : > { %s2359_s6 = scalar_lea.vmem %s2358_s24, 512  ;;  %p2360_p7 = scmp.lt.s32.totalorder %s3012_s27, %s2358_s24 }
  0xae   : > { %p2355_p4 = pnand %p2354_p8, %p3562_p2  ;;  %p2361_p6 = scmp.lt.s32.totalorder %s2359_s6, %s2353_s28 }
  0xb0   : > { %p2356_p3 = pneg %p2355_p4  ;;  %p2362_p12 = por %p2361_p6, %p2360_p7 }
  0xb2   : > { %p2363_p11 = pnand %p2362_p12, %p2356_p3 }
  0xb4   : > { %2366 = shalt.err (!%p2363_p11)
}
  0xb5   : > { %s3519_s1 = smov 128   ;;  %s3521_s29 = smov 8  }
  0xb6   : > { %2071 = dma.hbm_to_vmem [thread:$0]  (%p3562_p2), %s3010_s18, 256, %s3012_s27, %s3016_s14, %s3519_s1, %s3519_s1, %s3521_s29  }
  0xb7   : > { %s3565_s25 = sshll.u32 %s2641_s20, 5  ;;  %s3566_s12 = sshll.u32 %s2961_s22, 1 }
  0xb8   : > { %s3048_s28 = scalar_lea.hbm %s3473_s0, %s3565_s25  ;;  %s451_s24 = scalar_lea.vmem [#allocation2], %s3566_s12 }
  0xb9   : > { %s458_s6 = sshll.u32 %s451_s24, 4  ;;  %s3567_s4 = sshll.u32 %s3004_s26, 4  ;;  %s3054_s4 = int_to_ptr.vmem [resolvable:$true] %s3567_s4  ;;  %s3056_s6 = int_to_ptr.vmem [resolvable:$true] %s458_s6 }
  0xba   : > { %s535_s9 = sand.u32 1, %s2613_s30   ;;  %s448_s18 = scalar_lea.sflag [#allocation3], %s2961_s22 }
  0xbb   : > { %s2367_s27 = scalar_lea.hbm %s3048_s28, 32  ;;  %s2371_s15 = scalar_lea.hbm %s3473_s0, 64 }
  0xbc   : > { %p2368_p13 = scmp.ne.s32.totalorder %s3048_s28, %s2367_s27  ;;  %p2372_p10 = scmp.lt.u32.totalorder %s3048_s28, %s3473_s0 }
  0xbd   : > { %p2373_p0 = scmp.lt.u32.totalorder %s2371_s15, %s2367_s27  ;;  %p2375_p8 = scmp.lt.u32.totalorder %s2367_s27, %s3048_s28 }
  0xbe   : > { %p2369_p5 = pnand %p2368_p13, %p3562_p2 }
  0xbf   : > { %p2374_p1 = por %p2373_p0, %p2372_p10 }
  0xc0   : > { %p2370_p9 = pneg %p2369_p5 }
  0xc1   : > { %p2376_p4 = por %p2375_p8, %p2374_p1 }
  0xc3   : > { %p2377_p3 = pnand %p2376_p4, %p2370_p9 }
  0xc5   : > { %2380 = shalt.err (!%p2377_p3)
}
  0xc6   : > { %s2381_s22 = scalar_lea.vmem %s3056_s6, 32  ;;  %s2655_s26 = smov [#allocation2]  }
  0xc7   : > { %p2382_p7 = scmp.ne.s32.totalorder %s3056_s6, %s2381_s22  ;;  %s2385_s12 = sshll.u32 %s2655_s26, 4  ;;  %s2386_s12 = int_to_ptr.vmem [resolvable:$false] %s2385_s12 }
  0xc8   : > { %s2387_s1 = scalar_lea.vmem %s2386_s12, 64  ;;  %p2388_p11 = scmp.lt.s32.totalorder %s3056_s6, %s2386_s12 }
  0xc9   : > { %p2383_p6 = pnand %p2382_p7, %p3562_p2  ;;  %p2389_p13 = scmp.lt.s32.totalorder %s2387_s1, %s2381_s22 }
  0xcb   : > { %p2384_p12 = pneg %p2383_p6  ;;  %p2390_p5 = por %p2389_p13, %p2388_p11 }
  0xcd   : > { %p2391_p10 = pnand %p2390_p5, %p2384_p12 }
  0xcf   : > { %2394 = shalt.err (!%p2391_p10)
}
  0xd0   : > { %2068 = dma.hbm_to_vmem [thread:$0]  (%p3562_p2), %s3048_s28, 32, %s3056_s6, %s448_s18  }
  0xd1   : > { %s2395_s29 = scalar_lea.hbm %s3002_s7, 256  ;;  %s2399_s25 = scalar_lea.hbm %s3476_s3, 512 }
  0xd2   : > { %p2396_p9 = scmp.ne.s32.totalorder %s3002_s7, %s2395_s29  ;;  %p2400_p8 = scmp.lt.u32.totalorder %s3002_s7, %s3476_s3 }
  0xd3   : > { %p2401_p4 = scmp.lt.u32.totalorder %s2399_s25, %s2395_s29  ;;  %p2403_p7 = scmp.lt.u32.totalorder %s2395_s29, %s3002_s7 }
  0xd4   : > { %p2397_p0 = pnand %p2396_p9, %p3562_p2 }
  0xd5   : > { %p2402_p3 = por %p2401_p4, %p2400_p8 }
  0xd6   : > { %p2398_p1 = pneg %p2397_p0 }
  0xd7   : > { %p2404_p6 = por %p2403_p7, %p2402_p3 }
  0xd9   : > { %p2405_p12 = pnand %p2404_p6, %p2398_p1 }
  0xdb   : > { %2408 = shalt.err (!%p2405_p12)
}
  0xdc   : > { %s2409_s28 = scalar_lea.vmem %s3054_s4, 256  ;;  %s2656_s6 = smov [#allocation7]  }
  0xdd   : > { %p2410_p11 = scmp.ne.s32.totalorder %s3054_s4, %s2409_s28  ;;  %s2413_s18 = sshll.u32 %s2656_s6, 4  ;;  %s2414_s18 = int_to_ptr.vmem [resolvable:$false] %s2413_s18 }
  0xde   : > { %s2415_s22 = scalar_lea.vmem %s2414_s18, 512  ;;  %p2416_p10 = scmp.lt.s32.totalorder %s3054_s4, %s2414_s18 }
  0xdf   : > { %p2411_p13 = pnand %p2410_p11, %p3562_p2  ;;  %p2417_p9 = scmp.lt.s32.totalorder %s2415_s22, %s2409_s28 }
  0xe1   : > { %p2412_p5 = pneg %p2411_p13  ;;  %p2418_p0 = por %p2417_p9, %p2416_p10 }
  0xe3   : > { %p2419_p8 = pnand %p2418_p0, %p2412_p5 }
  0xe5   : > { %2422 = shalt.err (!%p2419_p8)
}
  0xe6   : > { %s3568_s26 = smov 8   ;;  %s3569_s12 = smov 128  }
  0xe7   : > { %2070 = dma.hbm_to_vmem [thread:$0]  (%p3562_p2), %s3002_s7, 256, %s3054_s4, %s2977_s13, %s3569_s12, %s3569_s12, %s3568_s26  }
  0xe8   : > { %s3108_s1 = sshll.u32 %s535_s9, 4  ;;  %s1918_s29 = sshll.u32 %s2637_s19, 7 }
  0xe9   : > { %s3116_s23 = scalar_lea.hbm %s3478_s5, %s1918_s29  ;;  %s537_s25 = scalar_lea.vmem [#allocation10], %s3108_s1 }
  0xea   : > { %s543_s2 = sshll.u32 %s537_s25, 4  ;;  %s2423_s4 = scalar_lea.hbm %s3116_s23, 256  ;;  %s3119_s2 = int_to_ptr.vmem [resolvable:$true] %s543_s2 }
  0xeb   : > { %p2424_p2 = scmp.ne.s32.totalorder %s3116_s23, %s2423_s4  ;;  %p3570_p1 = scmp.ne.s32.totalorder %s3547_s8, 0 }
  0xec   : > { %s2427_s15 = scalar_lea.hbm %s3478_s5, 512  ;;  %p2428_p7 = scmp.lt.u32.totalorder %s3116_s23, %s3478_s5 }
  0xed   : > { %p2425_p4 = pnand %p2424_p2, %p3570_p1  ;;  %p2429_p6 = scmp.lt.u32.totalorder %s2427_s15, %s2423_s4 }
  0xee   : > { %p2431_p11 = scmp.lt.u32.totalorder %s2423_s4, %s3116_s23 }
  0xef   : > { %p2426_p3 = pneg %p2425_p4  ;;  %p2430_p12 = por %p2429_p6, %p2428_p7 }
  0xf1   : > { %p2432_p13 = por %p2431_p11, %p2430_p12 }
  0xf3   : > { %p2433_p5 = pnand %p2432_p13, %p2426_p3 }
  0xf5   : > { %2436 = shalt.err (!%p2433_p5)
}
  0xf6   : > { %s2437_s18 = scalar_lea.vmem %s3119_s2, 256  ;;  %s2657_s22 = smov [#allocation10]  }
  0xf7   : > { %p2438_p10 = scmp.ne.s32.totalorder %s3119_s2, %s2437_s18  ;;  %s2441_s24 = sshll.u32 %s2657_s22, 4  ;;  %s2442_s24 = int_to_ptr.vmem [resolvable:$false] %s2441_s24 }
  0xf8   : > { %s2443_s27 = scalar_lea.vmem %s2442_s24, 512  ;;  %p2444_p8 = scmp.lt.s32.totalorder %s3119_s2, %s2442_s24 }
  0xf9   : > { %p2439_p9 = pnand %p2438_p10, %p3570_p1  ;;  %p2445_p2 = scmp.lt.s32.totalorder %s2443_s27, %s2437_s18 }
  0xfb   : > { %p2440_p0 = pneg %p2439_p9  ;;  %p2446_p4 = por %p2445_p2, %p2444_p8 }
  0xfd   : > { %p2447_p7 = pnand %p2446_p4, %p2440_p0 }
  0xff   : > { %2450 = shalt.err (!%p2447_p7)
}
 0x100   : > { %s2658_s25 = smov 256   ;;  %552 = sbr.rel (!%p3570_p1) target bundleno = 263 (0x107), region = 60 }
 0x101   : > { %2072 = dma.hbm_to_vmem [thread:$0]  (%p3570_p1), %s3116_s23, 256, %s3119_s2, %s3016_s14, %s2658_s25, %s3569_s12, %s3568_s26  }
 0x102   : > { %s1920_s4 = sshll.u32 (%p3570_p1), %s2637_s19, 3  ;;  %s556_s28 = scalar_lea.vmem (%p3570_p1), [#allocation14], %s3108_s1 }
 0x103   : > { %s558_s15 = scalar_lea.vmem (%p3570_p1), %s3483_s10, %s1920_s4 }
 0x104   : > { %v588_v0 = vld [vmem:[%s558_s15] sm:$0xff] (%p3570_p1)  ;;  %v590_v1 = vld [vmem:[%s558_s15 + $0x10] sm:$0xff] (%p3570_p1) }
 0x105   : > { %589 = vst [vmem:[%s556_s28] sm:$0xff] (%p3570_p1), %v588_v0  ;;  %591 = vst [vmem:[%s556_s28 + $0x8] sm:$0xff] (%p3570_p1), %v590_v1 }
 0x107 PF: > { %s3158_s26 = scalar_lea.hbm %s3484_s11, %s1918_s29  ;;  %s602_s12 = scalar_lea.vmem [#allocation15], %s3108_s1 }
 0x108   : > { %s608_s23 = sshll.u32 %s602_s12, 4  ;;  %s3165_s2 = scalar_lea.sflag [#allocation16], %s535_s9  ;;  %s3161_s23 = int_to_ptr.vmem [resolvable:$true] %s608_s23 }
 0x109   : > { %s2451_s18 = scalar_lea.hbm %s3158_s26, 256  ;;  %p3571_p3 = scmp.ne.s32.totalorder %s3547_s8, 0 }
 0x10a   : > { %p2452_p1 = scmp.ne.s32.totalorder %s3158_s26, %s2451_s18  ;;  %s2455_s29 = scalar_lea.hbm %s3484_s11, 512 }
 0x10b   : > { %p2456_p11 = scmp.lt.u32.totalorder %s3158_s26, %s3484_s11  ;;  %p2457_p13 = scmp.lt.u32.totalorder %s2455_s29, %s2451_s18 }
 0x10c   : > { %p2453_p6 = pnand %p2452_p1, %p3571_p3  ;;  %p2459_p10 = scmp.lt.u32.totalorder %s2451_s18, %s3158_s26 }
 0x10d   : > { %p2458_p5 = por %p2457_p13, %p2456_p11 }
 0x10e   : > { %p2454_p12 = pneg %p2453_p6 }
 0x10f   : > { %p2460_p9 = por %p2459_p10, %p2458_p5 }
 0x111   : > { %p2461_p0 = pnand %p2460_p9, %p2454_p12 }
 0x113   : > { %2464 = shalt.err (!%p2461_p0)
}
 0x114   : > { %s2465_s9 = scalar_lea.vmem %s3161_s23, 256  ;;  %s2659_s1 = smov [#allocation15]  }
 0x115   : > { %p2466_p8 = scmp.ne.s32.totalorder %s3161_s23, %s2465_s9  ;;  %s2469_s13 = sshll.u32 %s2659_s1, 4  ;;  %s2470_s13 = int_to_ptr.vmem [resolvable:$false] %s2469_s13 }
 0x116   : > { %s2471_s7 = scalar_lea.vmem %s2470_s13, 512  ;;  %p2472_p7 = scmp.lt.s32.totalorder %s3161_s23, %s2470_s13 }
 0x117   : > { %p2467_p2 = pnand %p2466_p8, %p3571_p3  ;;  %p2473_p1 = scmp.lt.s32.totalorder %s2471_s7, %s2465_s9 }
 0x119   : > { %p2468_p4 = pneg %p2467_p2  ;;  %p2474_p6 = por %p2473_p1, %p2472_p7 }
 0x11b   : > { %p2475_p11 = pnand %p2474_p6, %p2468_p4 }
 0x11d   : > { %2478 = shalt.err (!%p2475_p11)
}
 0x11e   : > { %s3572_s15 = smov 8   ;;  %s3573_s28 = smov 128  }
 0x11f   : > { %2073 = dma.hbm_to_vmem [thread:$0]  (%p3571_p3), %s3158_s26, 256, %s3161_s23, %s3165_s2, %s2658_s25, %s3573_s28, %s3572_s15  }
 0x120 PF: > { %p3574_p12 = scmp.ne.s32.totalorder %s3556_s17, 0 }
 0x121   : > { %s3575_s6 = sld [smem:[#allocation29_spill]] (!%p3574_p12)  ;;  %s3576_s14 = sld [smem:[#allocation35_spill]] (!%p3574_p12) }
 0x122   : > { %626 = sbr.rel (%p3574_p12) target bundleno = 1106 (0x452), region = 106 }
 0x127   : > { %s628_s12 = sand.u32 (!%p3574_p12), 1, %s3575_s6   ;;  %p3577_p13 = scmp.ne.s32.totalorder (!%p3574_p12), %s3576_s14, 0 }
 0x128   : > { %s1924_s18 = sshll.u32 (!%p3574_p12), %s628_s12, 1  ;;  %s629_s22 = scalar_lea.sflag (!%p3574_p12), [#allocation3], %s628_s12 }
 0x129   : > { %s632_s24 = scalar_lea.vmem [#allocation2], %s1924_s18 }
 0x12a   : > { %2564 = dma.done.wait (%p3577_p13), %s629_s22, 32  }
 0x12b   : > { %2566 = vsyncadd (%p3577_p13), %s629_s22, 4294967264  ;;  %s3578_s8 = sld [smem:[#allocation32_spill]]  ;;  %s3200_s25 = scalar_lea.vmem [#allocation5], %s1924_s18 }
 0x131   : > { %s637_s29 = sand.u32 1, %s3578_s8  }
 0x132   : > { %s638_s27 = scalar_lea.sflag [#allocation6], %s637_s29 }
 0x133   : > { %2568 = dma.done.wait (%p3577_p13), %s638_s27, 288  }
 0x134   : > { %2570 = vsyncadd (%p3577_p13), %s638_s27, 4294967008  ;;  %s1926_s17 = sshll.u32 %s628_s12, 4  ;;  %s656_s23 = scalar_lea.sflag [#allocation9], %s637_s29 }
 0x135   : > { %s3206_s26 = scalar_lea.vmem [#allocation7], %s1926_s17  ;;  %s3208_s2 = scalar_lea.vmem [#allocation8], %s1926_s17 }
 0x136   : > { %2572 = dma.done.wait (%p3577_p13), %s656_s23, 256  }
 0x137   : > { %2574 = vsyncadd (%p3577_p13), %s656_s23, 4294967040  ;;  %s3579_s4 = sld [smem:[#allocation28_spill]]  ;;  %s3580_s9 = sld [smem:[#allocation38_spill]] }
 0x13d   : > { %s666_s1 = sand.u32 1, %s3579_s4   ;;  %p3581_p3 = scmp.ne.s32.totalorder %s3580_s9, 0 }
 0x13e   : > { %s3215_s13 = sshll.u32 %s666_s1, 4 }
 0x13f   : > { %s668_s7 = scalar_lea.vmem [#allocation10], %s3215_s13 }
 0x140   : > { %2576 = dma.done.wait (%p3581_p3), %s656_s23, 256  }
 0x141   : > { %2578 = vsyncadd (%p3581_p3), %s656_s23, 4294967040  ;;  %p3582_p5 = scmp.eq.s32.totalorder %s3578_s8, 0 }
 0x143   : > { %2580 = dma.done.wait (%p3582_p5), [#allocation12], 512   ;;  %p3583_p10 = pmov %p3582_p5 }
 0x144   : > { %s684_s15 = scalar_lea.vmem [#allocation14], %s3215_s13  ;;  %s689_s28 = scalar_lea.sflag [#allocation16], %s666_s1 }
 0x145   : > { %2582 = vsyncadd (%p3583_p10), [#allocation12], 4294966784  ;;  %s692_s6 = scalar_lea.vmem [#allocation15], %s3215_s13 }
 0x146   : > { %2584 = dma.done.wait (%p3581_p3), %s689_s28, 256  }
 0x147   : > { %2586 = vsyncadd (%p3581_p3), %s689_s28, 4294967040  ;;  %vm796_vm0 = vcmask 15360   ;;  %v779_v2 = vld [vmem:[%s632_s24] sm:$0x3]  ;;  %vm803_vm1 = vcmask 1041408   ;;  %s3584_s18 = sld [smem:[#allocation47_spill]] }
 0x148   : > { %v795_v4 = vmul.f32 0.0003926991, %v779_v2  ;;  %s3586_s8 = sld [smem:[#allocation31_spill]]  ;;  %v793_v5 = vld [vmem:[#allocation11] sm:$0xff]  ;;  %v794_v6 = vld [vmem:[#allocation11 + $0x8] sm:$0xff]  ;;  %vm882_vm2 = vcmask 130048  }
 0x149   : > { %v2042_v8 = vpack.c.bf16 %v794_v6, %v793_v5  ;;  %v780_v9 = vld [vmem:[%s3200_s25] sm:$0x3]  ;;  %v791_v10 = vld [vmem:[#allocation13] sm:$0xff]  ;;  %s3587_s9 = sld [smem:[#allocation43_spill]]  ;;  %s3588_s14 = sld [smem:[#allocation46_spill]]  ;;  %v2660_v17 = vmov 0.0  }
 0x14a   : > { %1999 = vmatprep.subr.msk.mxu0 %vm803_vm1, %v795_v4  ;;  %v1153_v11 = vld [vmem:[%s668_s7] sm:$0xff]  ;;  %v1154_v12 = vld [vmem:[%s668_s7 + $0x8] sm:$0xff]  ;;  %s2664_s29 = smov 9   ;;  %s2665_s27 = smov 8   ;;  %vm1605_vm5 = vcmask 1040384   ;;  %vm1608_vm6 = vcmask 1042432  }
 0x14b   : > { %2000 = vmatpush3.msk.msra.mxu0 %vm803_vm1, %v795_v4  ;;  %2043 = vmatprep.subr.bf16.mxu1 %v2042_v8  ;;  %v2050_v16 = vpack.c.bf16 %v1154_v12, %v1153_v11  ;;  %v783_v26 = vld [vmem:[%s3206_s26] sm:$0xff]  ;;  %v784_v29 = vld [vmem:[%s3206_s26 + $0x8] sm:$0xff]  ;;  %s2661_s26 = smov 2   ;;  %s2668_s23 = smov 11   ;;  %vm1610_vm7 = vcmask 1043456   ;;  %vm1612_vm8 = vcmask 1044480  }
 0x14c   : > { %2045 = vmatpush3.bf16.msra.mxu1 %v2042_v8  ;;  %v785_v30 = vld [vmem:[%s3208_s2] sm:$0xff]  ;;  %v792_v31 = vld [vmem:[#allocation13 + $0x8] sm:$0xff]  ;;  %s2669_s4 = smov 5   ;;  %s2672_s25 = smov 13   ;;  %vm1614_vm9 = vcmask 1045504   ;;  %vm1616_vm10 = vcmask 1046528  }
 0x14d   : > { %s3585_s22 = smov %s3584_s18  ;;  %v789_v3 = vld [vmem:[%s3584_s18] sm:$0xff]  ;;  %2018 = vmatprep.subr.msk.mxu1 %vm803_vm1, %v780_v9  ;;  %v1522_v44 = vld [vmem:[%s684_s15] sm:$0xff]  ;;  %s2673_s28 = smov 7  }
 0x14e   : > { %2001 = vmatprep.mubr.msk.f32.mxu0 %vm796_vm0, %v789_v3  ;;  %v790_v7 = vld [vmem:[%s3585_s22 + $0x8] sm:$0xff]  ;;  %p771_p9 = scmp.lt.s32.totalorder %s3586_s8, 1  ;;  %v786_v32 = vld [vmem:[%s3208_s2 + $0x8] sm:$0xff]  ;;  %s2662_s2 = smov 1  }
 0x14f   : > { %2002 = vmatmul.mubr.msk.f32.vlgmr.msra.gmra.mrb[0].mxu0 %vm796_vm0, %v790_v7  ;;  %s3589_s12 = smov %s3588_s14  ;;  %v787_v15 = vld [vmem:[%s3588_s14] sm:$0xff]  ;;  %s2674_s14 = smov 14  }
 0x150   : > { %2015 = vmatprep.mubr.msk.f32.mxu0 %vm882_vm2, %v791_v10  ;;  %s772_s24 = scalar_select %p771_p9, %s3586_s8, 1  ;;  %v788_v24 = vld [vmem:[%s3589_s12 + $0x8] sm:$0xff]  ;;  %v1523_v43 = vld [vmem:[%s684_s15 + $0x8] sm:$0xff] }
 0x151   : > { %s2663_s15 = smov 10   ;;  %s2675_s7 = smov 15  }
 0x152   : > { %s1972_s17 = sshll.u32 %s772_s24, 4  ;;  %s2666_s24 = smov 3  }
 0x153   : > { %s775_s1 = scalar_lea.vmem %s3587_s9, %s1972_s17  ;;  %s2667_s17 = smov 4  }
 0x154   : > { %v782_v19 = vld [vmem:[%s775_s1 + $0x8] sm:$0xff]  ;;  %v781_v22 = vld [vmem:[%s775_s1] sm:$0xff]  ;;  %s2670_s9 = smov 12   ;;  %s2671_s1 = smov 6  }
 0x155   : > { %s3590_s18 = sld [smem:[#allocation30_spill]]  ;;  %s3592_s13 = sld [smem:[#allocation26_spill]] }
 0x15b   : > { %p776_p0 = scmp.lt.s32.totalorder %s3590_s18, 1 }
 0x222   : > { %v2003_v13 = vpop.f32.mrb[0].mxu0 }
 0x223   : > { %vm973_vm3 = vcmp.lt.f32.partialorder %v2003_v13, 3.1415927  ;;  %v873_v14 = vpop.f32.mrb[1].mxu0 }
 0x224   : > { %v1941_v18 = vsel %vm973_vm3, 1.0, %v2660_v17  ;;  %vm972_vm4 = vcmp.lt.f32.partialorder %v873_v14, 3.1415927  ;;  %2008 = vmatprep.mubr.msk.f32.mxu1 %vm882_vm2, %v873_v14 }
 0x225   : > { %v979_v20 = vadd.f32 0.0001, %v1941_v18  ;;  %v1940_v21 = vsel %vm972_vm4, 1.0, %v2660_v17  ;;  %2009 = vmatmul.mubr.msk.f32.vlgmr.msra.gmra.mrb[0].mxu1 %vm882_vm2, %v2003_v13 }
 0x226   : > { %v978_v23 = vadd.f32 0.0001, %v1940_v21  ;;  %2019 = vmatpush3.msk.msra.mxu1 %vm803_vm1, %v780_v9  ;;  %2020 = vmatprep.mubr.msk.f32.mxu1 %vm796_vm0, %v787_v15 }
 0x227   : > { %2054 = vmatprep.subr.bf16.mxu1 %v2050_v16  ;;  %v981_v25 = vmul.f32 %v979_v20, %v782_v19 }
 0x228   : > { %v980_v27 = vmul.f32 %v978_v23, %v781_v22 }
 0x229   : > { %2021 = vmatmul.mubr.msk.f32.vlgmr.msra.gmra.mrb[2].mxu1 %vm796_vm0, %v788_v24 }
 0x22a   : > { %2055 = vmatpush3.bf16.msra.mxu1 %v2050_v16  ;;  %v2046_v28 = vpack.c.bf16 %v981_v25, %v980_v27  ;;  %2036 = vmatprep.mubr.msk.f32.mxu1 %vm882_vm2, %v783_v26 }
 0x22c   : > { %2047 = vmatprep.subr.bf16.mxu0 %v2046_v28 }
 0x22d   : > { %2049 = vmatpush3.bf16.msra.mxu0 %v2046_v28  ;;  %2037 = vmatmul.mubr.msk.f32.vlgmr.msra.gmra.mrb[4].mxu1 %vm882_vm2, %v784_v29 }
 0x22e   : > { %2051 = vmatprep.subr.bf16.mxu0 %v2050_v16  ;;  %2039 = vmatprep.mubr.msk.f32.mxu1 %vm882_vm2, %v785_v30 }
 0x230   : > { %2016 = vmatmul.mubr.msk.f32.vlgmr.msra.gmra.mrb[2].mxu0 %vm882_vm2, %v792_v31 }
 0x231   : > { %2053 = vmatpush3.bf16.msra.mxu0 %v2050_v16  ;;  %2027 = vmatprep.mubr.msk.f32.mxu0 %vm882_vm2, %v873_v14 }
 0x232   : > { %2040 = vmatmul.mubr.msk.f32.gmra.mrb[6].mxu1 %vm882_vm2, %v786_v32 }
 0x234   : > { %2028 = vmatmul.mubr.msk.f32.vlgmr.msra.gmra.mrb[4].mxu0 %vm882_vm2, %v2003_v13 }
 0x2f8   : > { %v2010_v33 = vpop.f32.mrb[0].mxu1 }
 0x2f9   : > { %v965_v34 = vmul.f32 0.15915494, %v2010_v33  ;;  %v955_v35 = vpop.f32.mrb[1].mxu1 }
 0x2fa   : > { %v964_v36 = vmul.f32 0.15915494, %v955_v35 }
 0x2fb   : > { %v967_v37 = vfloor.f32 %v965_v34 }
 0x2fc   : > { %v966_v38 = vfloor.f32 %v964_v36  ;;  %v2022_v39 = vpop.f32.mrb[2].mxu1 }
 0x2fd   : > { %v969_v40 = vmul.f32 6.2831855, %v967_v37  ;;  %v1142_v41 = vpop.f32.mrb[3].mxu1 }
 0x2fe   : > { %v968_v42 = vmul.f32 6.2831855, %v966_v38 }
 0x2ff   : > { %v971_v47 = vsub.f32 %v2010_v33, %v969_v40 }
 0x300   : > { %v970_v45 = vsub.f32 %v955_v35, %v968_v42  ;;  %v2038_v46 = vpop.f32.mrb[4].mxu1 }
 0x301   : > { %v1525_v48 = vmul.f32 %v2038_v46, %v1523_v43  ;;  %v1275_v49 = vpop.f32.mrb[5].mxu1 }
 0x302   : > { %v1524_v50 = vmul.f32 %v1522_v44, %v1275_v49  ;;  %2030 = vmatprep.mubr.msk.f32.mxu0 %vm882_vm2, %v970_v45  ;;  %v1625_v45 = vld [vmem:[%s692_s6] sm:$0xff]  ;;  %v1626_v49 = vld [vmem:[%s692_s6 + $0x8] sm:$0xff]  ;;  %s769_s6 = sand.u32 1, %s3592_s13  }
 0x303   : > { %v2017_v51 = vpop.f32.mrb[2].mxu0  ;;  %2031 = vmatmul.mubr.msk.f32.gmra.mrb[6].mxu0 %vm882_vm2, %v971_v47 }
 0x304   : > { %v1526_v52 = vadd.f32 %v1525_v48, %v1524_v50  ;;  %2243 = vrcp.f32 %v2017_v51  ;;  %v1054_v53 = vpop.f32.mrb[3].mxu0 }
 0x305   : > { %2245 = vrcp.f32 %v1054_v53  ;;  %v3288_v4 = vpop.f32.mrb[6].mxu1 }
 0x306   : > { %v1527_v54 = vrot.slane %v1526_v52, 4  ;;  %v3290_v5 = vpop.f32.mrb[7].mxu1 }
 0x307   : > { %v3282_v55 = vpop.f32.mrb[4].mxu0 }
 0x308   : > { %v1528_v56 = vadd.f32 %v1527_v54, %v1526_v52  ;;  %v3284_v57 = vpop.f32.mrb[5].mxu0 }
 0x30a   : > { %v1529_v58 = vrot.slane %v1528_v56, 2 }
 0x30c   : > { %v1530_v59 = vadd.f32 %v1529_v58, %v1528_v56 }
 0x30e   : > { %v2244_v60 = vpop.eup %2243  ;;  %v1531_v61 = vrot.slane %v1530_v59, 1 }
 0x30f   : > { %v2246_v62 = vpop.eup %2245  ;;  %v1066_v63 = vmul.f32 %v2244_v60, %v981_v25 }
 0x310   : > { %v1532_v0 = vadd.f32 %v1531_v61, %v1530_v59  ;;  %v1065_v1 = vmul.f32 %v2246_v62, %v980_v27 }
 0x311   : > { %v1152_v2 = vmul.f32 %v2022_v39, %v1066_v63 }
 0x312   : > { %1535 = vrot.lane.b32.xlu1 %v1532_v0, %s2661_s26  ;;  %1533 = vrot.lane.b32.xlu0 %v1532_v0, %s2662_s2  ;;  %v1151_v3 = vmul.f32 %v1142_v41, %v1065_v1  ;;  %s777_s26 = scalar_select %p776_p0, %s3590_s18, 1 }
 0x313   : > { %s2682_s2 = smov [#allocation17]  }
 0x314   : > { %2033 = vmatprep.mubr.msk.f32.mxu0 %vm882_vm2, %v1151_v3 }
 0x315   : > { %2034 = vmatmul.mubr.msk.f32.gmra.mrb[8].mxu0 %vm882_vm2, %v1152_v2 }
 0x316   : > { %1551 = vrot.lane.b32.xlu1 %v1532_v0, %s2663_s15  ;;  %1549 = vrot.lane.b32.xlu0 %v1532_v0, %s2664_s29  ;;  %s3591_s29 = sld [smem:[#allocation49_spill]]  ;;  %s2483_s15 = sshll.u32 %s2682_s2, 4  ;;  %s2484_s15 = int_to_ptr.vmem [resolvable:$false] %s2483_s15 }
 0x31a   : > { %1547 = vrot.lane.b32.xlu1 %v1532_v0, %s2665_s27  ;;  %1537 = vrot.lane.b32.xlu0 %v1532_v0, %s2666_s24  ;;  %s1966_s24 = sshll.u32 %s3586_s8, 1  ;;  %s1641_s8 = scalar_lea.sflag [#allocation4], %s769_s6 }
 0x31c   : > { %s778_s27 = scalar_lea.vmem %s3591_s29, %s777_s26  ;;  %s2485_s29 = scalar_lea.vmem %s2484_s15, 32 }
 0x31d   : > { %v1957_v58 = vld [vmem:[%s778_s27] ss:$0 sm:$0xff] }
 0x31e   : > { %1539 = vrot.lane.b32.xlu1 %v1532_v0, %s2667_s17  ;;  %1553 = vrot.lane.b32.xlu0 %v1532_v0, %s2668_s23  ;;  %v1302_v59 = vmul.f32 %v3282_v55, %v1957_v58  ;;  %v1301_v60 = vmul.f32 %v1957_v58, %v3284_v57  ;;  %s3593_s17 = sld [smem:[#allocation40_spill]]  ;;  %s1651_s23 = sadd.s32 %s3590_s18, %s1966_s24 }
 0x322   : > { %1541 = vrot.lane.b32.xlu1 %v1532_v0, %s2669_s4  ;;  %1555 = vrot.lane.b32.xlu0 %v1532_v0, %s2670_s9  ;;  %s1967_s4 = sshll.u32 %s1651_s23, 4  ;;  %s770_s9 = scalar_lea.vmem [#allocation17], %s769_s6 }
 0x324   : > { %p3596_p2 = scmp.ne.s32.totalorder %s3593_s17, 0 }
 0x326   : > { %1543 = vrot.lane.b32.xlu1 %v1532_v0, %s2671_s1  ;;  %1557 = vrot.lane.b32.xlu0 %v1532_v0, %s2672_s25  ;;  %s1655_s1 = sshll.u32 %s770_s9, 4  ;;  %s3398_s1 = int_to_ptr.vmem [resolvable:$true] %s1655_s1 }
 0x327   : > { %s2479_s18 = scalar_lea.vmem %s3398_s1, 16  ;;  %p2486_p1 = scmp.lt.s32.totalorder %s3398_s1, %s2484_s15 }
 0x328   : > { %p2480_p8 = scmp.ne.s32.totalorder %s3398_s1, %s2479_s18  ;;  %p2487_p6 = scmp.lt.s32.totalorder %s2485_s29, %s2479_s18 }
 0x32a   : > { %1545 = vrot.lane.b32.xlu1 %v1532_v0, %s2673_s28  ;;  %1559 = vrot.lane.b32.xlu0 %v1532_v0, %s2674_s14  ;;  %s3594_s14 = sld [smem:[#allocation50_spill]]  ;;  %p2481_p4 = pnand %p2480_p8, %p3596_p2 }
 0x32b   : > { %p2488_p11 = por %p2487_p6, %p2486_p1 }
 0x32c   : > { %p2482_p7 = pneg %p2481_p4 }
 0x32e   : > { %1561 = vrot.lane.b32.xlu0 %v1532_v0, %s2675_s7  ;;  %p2489_p12 = pnand %p2488_p11, %p2482_p7 }
 0x330   : > { %s3595_s7 = smov %s3594_s14  ;;  %s3396_s26 = scalar_lea.hbm %s3594_s14, %s1967_s4 }
 0x384   : > { %v1536_v6 = vpop.permute.xlu1 %1535  ;;  %v1534_v7 = vpop.permute.xlu0 %1533 }
 0x385   : > { %v1564_v13 = vrot.slane %v1534_v7, 7  ;;  %v1567_v18 = vrot.slane %v1536_v6, 6 }
 0x387   : > { %v1606_v19 = vsel %vm1605_vm5, %v1532_v0, %v1564_v13 }
 0x388   : > { %v1552_v8 = vpop.permute.xlu1 %1551  ;;  %v1550_v9 = vpop.permute.xlu0 %1549  ;;  %v1607_v25 = vsel %vm803_vm1, %v1606_v19, %v1567_v18 }
 0x389   : > { %v1585_v12 = vrot.slane %v1550_v9, 7  ;;  %v1588_v14 = vrot.slane %v1552_v8, 6 }
 0x38c   : > { %v1548_v10 = vpop.permute.xlu1 %1547  ;;  %v1538_v11 = vpop.permute.xlu0 %1537 }
 0x38d   : > { %v1618_v17 = vsel %vm1605_vm5, %v1548_v10, %v1585_v12  ;;  %v1570_v24 = vrot.slane %v1538_v11, 5 }
 0x38e   : > { %v1619_v21 = vsel %vm803_vm1, %v1618_v17, %v1588_v14 }
 0x38f   : > { %v1609_v31 = vsel %vm1608_vm6, %v1607_v25, %v1570_v24 }
 0x390   : > { %v1540_v15 = vpop.permute.xlu1 %1539  ;;  %v1554_v16 = vpop.permute.xlu0 %1553 }
 0x391   : > { %v1591_v20 = vrot.slane %v1554_v16, 5  ;;  %v1573_v28 = vrot.slane %v1540_v15, 4 }
 0x393   : > { %v1620_v27 = vsel %vm1608_vm6, %v1619_v21, %v1591_v20  ;;  %v1611_v36 = vsel %vm1610_vm7, %v1609_v31, %v1573_v28  ;;  %v2676_v21 = vmov 2102212464  }
 0x394   : > { %v1542_v22 = vpop.permute.xlu1 %1541  ;;  %v1556_v23 = vpop.permute.xlu0 %1555 }
 0x395   : > { %v1594_v26 = vrot.slane %v1556_v23, 4  ;;  %v1576_v32 = vrot.slane %v1542_v22, 3  ;;  %v2677_v23 = vmov 920167782  }
 0x397   : > { %v1621_v34 = vsel %vm1610_vm7, %v1620_v27, %v1594_v26  ;;  %v1613_v39 = vsel %vm1612_vm8, %v1611_v36, %v1576_v32  ;;  %v2678_v27 = vmov 1326507024   ;;  %v2680_v36 = vmov 2475754826  }
 0x398   : > { %v1544_v29 = vpop.permute.xlu1 %1543  ;;  %v1558_v30 = vpop.permute.xlu0 %1557 }
 0x399   : > { %v1597_v33 = vrot.slane %v1558_v30, 3  ;;  %v1579_v35 = vrot.slane %v1544_v29, 2 }
 0x39b   : > { %v1622_v40 = vsel %vm1612_vm8, %v1621_v34, %v1597_v33  ;;  %v1615_v43 = vsel %vm1614_vm9, %v1613_v39, %v1579_v35  ;;  %v2679_v34 = vmov 683565275  }
 0x39c   : > { %v1546_v37 = vpop.permute.xlu1 %1545  ;;  %v1560_v38 = vpop.permute.xlu0 %1559 }
 0x39d   : > { %v1582_v41 = vrot.slane %v1546_v37, 1  ;;  %v1600_v42 = vrot.slane %v1560_v38, 2 }
 0x39f   : > { %v1617_v44 = vsel %vm1616_vm10, %v1615_v43, %v1582_v41  ;;  %v1623_v46 = vsel %vm1614_vm9, %v1622_v40, %v1600_v42  ;;  %v2681_v41 = vmov 2131351028  }
 0x3a0   : > { %v1562_v47 = vpop.permute.xlu0 %1561  ;;  %v1627_v50 = vmul.f32 %v1625_v45, %v1617_v44 }
 0x3a1   : > { %v1603_v48 = vrot.slane %v1562_v47, 1 }
 0x3a2   : > { %v1629_v54 = vmul.f32 %v1627_v50, %v3290_v5 }
 0x3a3   : > { %v1624_v51 = vsel %vm1616_vm10, %v1623_v46, %v1603_v48 }
 0x3a4   : > { %v1628_v52 = vmul.f32 %v1626_v49, %v1624_v51 }
 0x3a6   : > { %v1630_v53 = vmul.f32 %v3288_v4, %v1628_v52 }
 0x3a8   : > { %v3300_v56 = vadd.f32 %v1630_v53, %v1629_v54 }
 0x3d6   : > { %v2032_v61 = vpop.f32.mrb[6].mxu0 }
 0x3d7   : > { %v3309_v62 = vadd.f32 %v2032_v61, %v1302_v59  ;;  %v1255_v63 = vpop.f32.mrb[7].mxu0 }
 0x3d8   : > { %v3311_v0 = vadd.f32 %v1301_v60, %v1255_v63 }
 0x3d9   : > { %v1412_v1 = vand.u32 2139095040, %v3309_v62  ;;  %v1409_v2 = vand.u32 2147483647, %v3309_v62  ;;  %vm1411_vm9 = vcmp.lt.s32.totalorder %v3309_v62, 0 }
 0x3da   : > { %v1308_v3 = vand.u32 2139095040, %v3311_v0  ;;  %v1305_v57 = vand.u32 2147483647, %v3311_v0 }
 0x3db   : > { %v1413_v4 = vshrl.u32 %v1412_v1, 23  ;;  %v1416_v55 = vand.u32 8388607, %v1409_v2  ;;  %vm1410_vm10 = vcmp.le.f32.partialorder %v1409_v2, 0.7853982 }
 0x3dc   : > { %v1309_v5 = vshrl.u32 %v1308_v3, 23  ;;  %v3321_v11 = vand.u32 8388607, %v1305_v57 }
 0x3dd   : > { %v1962_v6 = vadd.s32 4294967169, %v1413_v4  ;;  %v1417_v10 = vor.u32 8388608, %v1416_v55 }
 0x3de   : > { %v1958_v7 = vadd.s32 4294967169, %v1309_v5  ;;  %v1313_v20 = vor.u32 8388608, %v3321_v11 }
 0x3df   : > { %v1419_v8 = vadd.s32 1, %v1962_v6  ;;  %v3325_v19 = vshll.u32 %v1417_v10, 8 }
 0x3e0   : > { %v1315_v9 = vadd.s32 1, %v1958_v7 }
 0x3e1   : > { %vm1420_vm11 = vcmp.gt.s32.totalorder %v1419_v8, 0 }
 0x3e2   : > { %v1421_v12 = vsel %vm1420_vm11, %v1419_v8, 0  ;;  %vm1316_vm12 = vcmp.gt.s32.totalorder %v1315_v9, 0  ;;  %vm1307_vm11 = vcmp.lt.s32.totalorder %v3311_v0, 0 }
 0x3e3   : > { %v1422_v13 = vshrl.u32 %v1421_v12, 5  ;;  %v1423_v14 = vand.u32 31, %v1421_v12  ;;  %v1317_v15 = vsel %vm1316_vm12, %v1315_v9, 0  ;;  %vm1306_vm12 = vcmp.le.f32.partialorder %v1305_v57, 0.7853982 }
 0x3e4   : > { %v1319_v16 = vand.u32 31, %v1317_v15  ;;  %v3323_v18 = vshrl.u32 %v1317_v15, 5 }
 0x3e5   : > { %v1424_v17 = vsub.s32 32, %v1423_v14  ;;  %v1435_v22 = vshll.u32 %v2676_v21, %v1423_v14  ;;  %v1438_v24 = vshll.u32 %v2677_v23, %v1423_v14  ;;  %vm1444_vm13 = vcmp.lt.s32.totalorder %v1422_v13, 4 }
 0x3e6   : > { %v1320_v25 = vsub.s32 32, %v1319_v16  ;;  %v1331_v29 = vshll.u32 %v2676_v21, %v1319_v16  ;;  %v1334_v30 = vshll.u32 %v2677_v23, %v1319_v16  ;;  %v1426_v35 = vshll.u32 %v2679_v34, %v1423_v14 }
 0x3e7   : > { %v1436_v26 = vshrl.u32 %v2677_v23, %v1424_v17  ;;  %v1439_v28 = vshrl.u32 %v2678_v27, %v1424_v17  ;;  %v1427_v37 = vshrl.u32 %v2680_v36, %v1424_v17  ;;  %v1429_v40 = vshll.u32 %v2680_v36, %v1423_v14 }
 0x3e8   : > { %v1332_v31 = vshrl.u32 %v2677_v23, %v1320_v25  ;;  %v1335_v32 = vshrl.u32 %v2678_v27, %v1320_v25  ;;  %v3328_v33 = vpop.f32.mrb[8].mxu0  ;;  %v1430_v42 = vshrl.u32 %v2681_v41, %v1424_v17  ;;  %vm1340_vm14 = vcmp.lt.s32.totalorder %v3323_v18, 4 }
 0x3e9   : > { %v1437_v38 = vor.u32 %v1436_v26, %v1435_v22  ;;  %v1440_v39 = vor.u32 %v1439_v28, %v1438_v24  ;;  %v3330_v43 = vpop.f32.mrb[9].mxu0  ;;  %v1428_v44 = vor.u32 %v1427_v37, %v1426_v35  ;;  %v1432_v45 = vshll.u32 %v2681_v41, %v1423_v14 }
 0x3ea   : > { %v1433_v46 = vshrl.u32 %v2676_v21, %v1424_v17  ;;  %v1425_v49 = vshrl.u32 %v2679_v34, %v1424_v17  ;;  %v1431_v50 = vor.u32 %v1430_v42, %v1429_v40  ;;  %v1333_v51 = vor.u32 %v1332_v31, %v1331_v29 }
 0x3eb   : > { %v1450_v47 = vsel %vm1444_vm13, %v1437_v38, 920167782  ;;  %v1454_v48 = vsel %vm1444_vm13, %v1440_v39, 1326507024  ;;  %v1336_v52 = vor.u32 %v1335_v32, %v1334_v30  ;;  %vm1441_vm15 = vcmp.lt.s32.totalorder %v1422_v13, 1 }
 0x3ec   : > { %v1434_v53 = vor.u32 %v1433_v46, %v1432_v45  ;;  %vm1442_vm0 = vcmp.lt.s32.totalorder %v1422_v13, 2  ;;  %vm1443_vm1 = vcmp.lt.s32.totalorder %v1422_v13, 3  ;;  %v1445_v54 = vsel %vm1441_vm15, %v1425_v49, %v1428_v44 }
 0x3ed   : > { %v1449_v58 = vsel %vm1441_vm15, %v1428_v44, %v1431_v50  ;;  %v1455_v63 = vsel %vm1443_vm1, %v1437_v38, %v1454_v48  ;;  %v1322_v5 = vshll.u32 %v2679_v34, %v1319_v16  ;;  %v1323_v8 = vshrl.u32 %v2680_v36, %v1320_v25 }
 0x3ee   : > { %v1446_v59 = vsel %vm1444_vm13, %v1434_v53, 2102212464  ;;  %v1451_v60 = vsel %vm1443_vm1, %v1434_v53, %v1450_v47  ;;  %v1453_v61 = vsel %vm1441_vm15, %v1431_v50, %v1434_v53  ;;  %v1350_v9 = vsel %vm1340_vm14, %v1336_v52, 1326507024 }
 0x3ef   : > { %v1447_v1 = vsel %vm1443_vm1, %v1431_v50, %v1446_v59  ;;  %v1452_v3 = vsel %vm1442_vm0, %v1449_v58, %v1451_v60  ;;  %v1456_v4 = vsel %vm1442_vm0, %v1453_v61, %v1455_v63  ;;  %v1325_v13 = vshll.u32 %v2680_v36, %v1319_v16 }
 0x3f0   : > { %v1448_v6 = vsel %vm1442_vm0, %v1445_v54, %v1447_v1  ;;  %v3337_v55 = vmul.u32.u64.low %v3325_v19, %v1456_v4  ;;  %v3338_v7 = vmul.u32.u64.high %v3325_v19, %v1456_v4, %v3337_v55  ;;  %v1324_v14 = vor.u32 %v1323_v8, %v1322_v5 }
 0x3f1   : > { %v3343_v10 = vmul.u32.u64.low %v3325_v19, %v1452_v3  ;;  %v3344_v12 = vmul.u32.u64.high %v3325_v19, %v1452_v3, %v3343_v10  ;;  %v1326_v15 = vshrl.u32 %v2681_v41, %v1320_v25  ;;  %v1328_v17 = vshll.u32 %v2681_v41, %v1319_v16 }
 0x3f2   : > { %v1329_v22 = vshrl.u32 %v2676_v21, %v1320_v25  ;;  %v1346_v23 = vsel %vm1340_vm14, %v1333_v51, 920167782  ;;  %v1464_v24 = vmul.u32 %v3325_v19, %v1448_v6  ;;  %v1321_v26 = vshrl.u32 %v2679_v34, %v1320_v25 }
 0x3f3   : > { %v1353_v27 = vshll.u32 %v1313_v20, 8  ;;  %vm1466_vm2 = vc.u32 %v3338_v7, %v3343_v10  ;;  %v1327_v28 = vor.u32 %v1326_v15, %v1325_v13  ;;  %vm1339_vm3 = vcmp.lt.s32.totalorder %v3323_v18, 3 }
 0x3f4   : > { %v1330_v29 = vor.u32 %v1329_v22, %v1328_v17  ;;  %v1467_v30 = vadd.s32 1, %v3344_v12  ;;  %vm1337_vm4 = vcmp.lt.s32.totalorder %v3323_v18, 1  ;;  %vm1338_vm5 = vcmp.lt.s32.totalorder %v3323_v18, 2 }
 0x3f5   : > { %v1351_v16 = vsel %vm1339_vm3, %v1333_v51, %v1350_v9  ;;  %v1345_v21 = vsel %vm1337_vm4, %v1324_v14, %v1327_v28  ;;  %v1341_v31 = vsel %vm1337_vm4, %v1321_v26, %v1324_v14  ;;  %v1465_v1 = vadd.s32 %v3343_v10, %v3338_v7 }
 0x3f6   : > { %v1342_v19 = vsel %vm1340_vm14, %v1330_v29, 2102212464  ;;  %v1347_v25 = vsel %vm1339_vm3, %v1330_v29, %v1346_v23  ;;  %v1349_v11 = vsel %vm1337_vm4, %v1327_v28, %v1330_v29  ;;  %v1468_v20 = vsel %vm1466_vm2, %v1467_v30, %v3344_v12 }
 0x3f7   : > { %v1348_v32 = vsel %vm1338_vm5, %v1345_v21, %v1347_v25  ;;  %v1352_v34 = vsel %vm1338_vm5, %v1349_v11, %v1351_v16  ;;  %v1469_v35 = vadd.s32 %v1468_v20, %v1464_v24  ;;  %v1343_v36 = vsel %vm1339_vm3, %v1327_v28, %v1342_v19 }
 0x3f8   : > { %v3363_v37 = vmul.u32.u64.low %v1353_v27, %v1352_v34  ;;  %v3364_v38 = vmul.u32.u64.high %v1353_v27, %v1352_v34, %v3363_v37  ;;  %v3366_v39 = vmul.u32.u64.low %v1353_v27, %v1348_v32  ;;  %v3367_v40 = vmul.u32.u64.high %v1353_v27, %v1348_v32, %v3366_v39 }
 0x3f9   : > { %v1470_v41 = vadd.s32 536870912, %v1469_v35  ;;  %v1344_v42 = vsel %vm1338_vm5, %v1341_v31, %v1343_v36  ;;  %vm1501_vm0 = vweird.f32 %v3309_v62  ;;  %vm1397_vm4 = vweird.f32 %v3311_v0 }
 0x3fa   : > { %vm1362_vm6 = vc.u32 %v3364_v38, %v3366_v39  ;;  %v1363_v45 = vadd.s32 1, %v3367_v40  ;;  %v1360_v47 = vmul.u32 %v1353_v27, %v1344_v42  ;;  %v1361_v24 = vadd.s32 %v3366_v39, %v3364_v38 }
 0x3fb   : > { %v1471_v44 = vshrl.u32 %v1470_v41, 30 }
 0x3fc   : > { %v1364_v48 = vsel %vm1362_vm6, %v1363_v45, %v3367_v40 }
 0x3fd   : > { %v1472_v46 = vshll.u32 %v1471_v44, 30  ;;  %v1365_v50 = vadd.s32 %v1364_v48, %v1360_v47  ;;  %v1495_v16 = vsub.s32 4, %v1471_v44 }
 0x3ff   : > { %v1473_v49 = vsub.s32 %v1469_v35, %v1472_v46  ;;  %v1366_v52 = vadd.s32 536870912, %v1365_v50  ;;  %v1496_v31 = vsel %vm1411_vm9, %v1495_v16, %v1471_v44 }
 0x400   : > { %v1498_v35 = vsel %vm1410_vm10, 0, %v1496_v31 }
 0x401   : > { %v1475_v51 = vsub.s32 0, %v1473_v49  ;;  %v1367_v54 = vshrl.u32 %v1366_v52, 30  ;;  %v1502_v39 = vadd.s32 3, %v1498_v35 }
 0x403   : > { %v1963_v53 = vmin.u32 %v1475_v51, %v1473_v49  ;;  %v1368_v59 = vshll.u32 %v1367_v54, 30  ;;  %v1391_v37 = vsub.s32 4, %v1367_v54  ;;  %v1503_v44 = vand.u32 3, %v1502_v39 }
 0x405   : > { %v1477_v58 = vclz %v1963_v53  ;;  %v1369_v18 = vsub.s32 %v1365_v50, %v1368_v59  ;;  %v1392_v40 = vsel %vm1307_vm11, %v1391_v37, %v1367_v54  ;;  %vm1505_vm13 = vcmp.eq.s32.totalorder %v1503_v44, 0 }
 0x406   : > { %v1394_v45 = vsel %vm1306_vm12, 0, %v1392_v40  ;;  %vm1508_vm14 = vcmp.eq.s32.totalorder %v1503_v44, 2  ;;  %vm1504_vm15 = vcmp.lt.s32.totalorder %v1503_v44, 2 }
 0x407   : > { %v1964_v60 = vadd.s32 4294967294, %v1477_v58  ;;  %v1371_v63 = vsub.s32 0, %v1369_v18  ;;  %v1632_v58 = vrot.slane %v3300_v56, 4 }
 0x409   : > { %vm1965_vm7 = vcmp.lt.s32.totalorder %v1964_v60, 0  ;;  %v1959_v5 = vmin.u32 %v1371_v63, %v1369_v18 }
 0x40a   : > { %v1480_v61 = vsel %vm1965_vm7, 0, %v1964_v60 }
 0x40b   : > { %v1481_v3 = vsub.s32 32, %v1480_v61  ;;  %v1485_v4 = vsub.s32 4294967266, %v1480_v61  ;;  %v1482_v6 = vshll.u32 %v1473_v49, %v1480_v61  ;;  %v1373_v9 = vclz %v1959_v5 }
 0x40c   : > { %v1398_v49 = vadd.s32 3, %v1394_v45 }
 0x40d   : > { %v1483_v55 = vshrl.u32 %v1465_v1, %v1481_v3  ;;  %v1486_v8 = vadd.s32 127, %v1485_v4  ;;  %v1960_v14 = vadd.s32 4294967294, %v1373_v9  ;;  %v1633_v1 = vadd.f32 %v1632_v58, %v3300_v56 }
 0x40e   : > { %v1399_v52 = vand.u32 3, %v1398_v49 }
 0x40f   : > { %v1484_v12 = vor.u32 %v1483_v55, %v1482_v6  ;;  %v1487_v13 = vshll.u32 %v1486_v8, 23  ;;  %vm1961_vm8 = vcmp.lt.s32.totalorder %v1960_v14, 0  ;;  %v1634_v6 = vrot.slane %v1633_v1, 2 }
 0x410   : > { %v1376_v23 = vsel %vm1961_vm8, 0, %v1960_v14  ;;  %vm1404_vm1 = vcmp.eq.s32.totalorder %v1399_v52, 2  ;;  %vm1401_vm2 = vcmp.eq.s32.totalorder %v1399_v52, 0  ;;  %vm1400_vm3 = vcmp.lt.s32.totalorder %v1399_v52, 2 }
 0x411   : > { %v1488_v15 = vor.u32 4788187, %v1487_v13  ;;  %v1491_v22 = vcvt.s32.f32 %v1484_v12  ;;  %v1377_v26 = vsub.s32 32, %v1376_v23  ;;  %v1381_v27 = vsub.s32 4294967266, %v1376_v23 }
 0x412   : > { %v1378_v10 = vshll.u32 %v1369_v18, %v1376_v23  ;;  %v1635_v9 = vadd.f32 %v1634_v6, %v1633_v1 }
 0x413   : > { %v1489_v17 = vand.u32 2147483647, %v1488_v15  ;;  %v1379_v28 = vshrl.u32 %v1361_v24, %v1377_v26  ;;  %v1382_v29 = vadd.s32 127, %v1381_v27 }
 0x414   : > { %v1636_v14 = vrot.slane %v1635_v9, 1 }
 0x415   : > { %v1492_v7 = vmul.f32 %v1491_v22, %v1489_v17  ;;  %v1380_v19 = vor.u32 %v1379_v28, %v1378_v10  ;;  %v1383_v21 = vshll.u32 %v1382_v29, 23 }
 0x417   : > { %v1493_v30 = vxor.u32 2147483648, %v1492_v7  ;;  %v1384_v20 = vor.u32 4788187, %v1383_v21  ;;  %v1387_v34 = vcvt.s32.f32 %v1380_v19 }
 0x419   : > { %v1494_v25 = vsel %vm1411_vm9, %v1493_v30, %v1492_v7  ;;  %v1385_v32 = vand.u32 2147483647, %v1384_v20 }
 0x41a   : > { %v1497_v11 = vsel %vm1410_vm10, %v3309_v62, %v1494_v25 }
 0x41b   : > { %2247 = vcosq.f32 %v1497_v11  ;;  %v1388_v36 = vmul.f32 %v1387_v34, %v1385_v32 }
 0x41c   : > { %2249 = vsinq.f32 %v1497_v11 }
 0x41d   : > { %v1389_v38 = vxor.u32 2147483648, %v1388_v36 }
 0x41f   : > { %v1390_v2 = vsel %vm1307_vm11, %v1389_v38, %v1388_v36 }
 0x420   : > { %v1393_v41 = vsel %vm1306_vm12, %v3311_v0, %v1390_v2  ;;  %v1637_v0 = vadd.f32 %v1636_v14, %v1635_v9 }
 0x421   : > { %2251 = vcosq.f32 %v1393_v41 }
 0x422   : > { %2253 = vsinq.f32 %v1393_v41 }
 0x425   : > { %v2248_v42 = vpop.eup %2247 }
 0x426   : > { %v2250_v46 = vpop.eup %2249  ;;  %v1509_v47 = vxor.u32 2147483648, %v2248_v42 }
 0x427   : > { %v1506_v48 = vxor.u32 2147483648, %v2250_v46 }
 0x428   : > { %v1510_v51 = vsel %vm1508_vm14, %v1509_v47, %v2250_v46 }
 0x429   : > { %v1507_v50 = vsel %vm1505_vm13, %v2248_v42, %v1506_v48 }
 0x42a   : > { %v1511_v57 = vsel %vm1504_vm15, %v1507_v50, %v1510_v51 }
 0x42b   : > { %v2252_v53 = vpop.eup %2251  ;;  %v1512_v60 = vsel %vm1501_vm0, nan, %v1511_v57 }
 0x42c   : > { %v2254_v54 = vpop.eup %2253  ;;  %v1405_v59 = vxor.u32 2147483648, %v2252_v53  ;;  %v1514_v3 = vmul.f32 %v3328_v33, %v1512_v60 }
 0x42d   : > { %v1402_v18 = vxor.u32 2147483648, %v2254_v54 }
 0x42e   : > { %v1406_v61 = vsel %vm1404_vm1, %v1405_v59, %v2254_v54 }
 0x42f   : > { %v1403_v63 = vsel %vm1401_vm2, %v2252_v53, %v1402_v18 }
 0x430   : > { %v1407_v4 = vsel %vm1400_vm3, %v1403_v63, %v1406_v61 }
 0x431   : > { %v1408_v5 = vsel %vm1397_vm4, nan, %v1407_v4 }
 0x432   : > { %v1513_v62 = vmul.f32 %v1408_v5, %v3330_v43 }
 0x434   : > { %v1515_v55 = vadd.f32 %v1514_v3, %v1513_v62 }
 0x436   : > { %v1516_v8 = vrot.slane %v1515_v55, 4 }
 0x438   : > { %v1517_v12 = vadd.f32 %v1516_v8, %v1515_v55 }
 0x43a   : > { %v1518_v13 = vrot.slane %v1517_v12, 2 }
 0x43c   : > { %v1519_v56 = vadd.f32 %v1518_v13, %v1517_v12 }
 0x43e   : > { %v1520_v15 = vrot.slane %v1519_v56, 1 }
 0x440   : > { %v1521_v33 = vadd.f32 %v1520_v15, %v1519_v56 }
 0x442   : > { %v1638_v17 = vadd.f32 %v1637_v0, %v1521_v33 }
 0x444   : > { %1639 = vst [vmem:[%s770_s9] sm:$0x1] %v1638_v17 }
 0x445   : > { %2492 = shalt.err (!%p2489_p12)
}
 0x446   : > { %s2493_s27 = scalar_lea.hbm %s3396_s26, 16  ;;  %s2497_s24 = scalar_lea.hbm %s3595_s7, 64 }
 0x447   : > { %p2494_p13 = scmp.ne.s32.totalorder %s3396_s26, %s2493_s27  ;;  %p2498_p10 = scmp.lt.u32.totalorder %s3396_s26, %s3595_s7 }
 0x448   : > { %p2499_p9 = scmp.lt.u32.totalorder %s2497_s24, %s2493_s27  ;;  %p2501_p8 = scmp.lt.u32.totalorder %s2493_s27, %s3396_s26 }
 0x449   : > { %p2495_p3 = pnand %p2494_p13, %p3596_p2 }
 0x44a   : > { %p2500_p0 = por %p2499_p9, %p2498_p10 }
 0x44b   : > { %p2496_p5 = pneg %p2495_p3 }
 0x44c   : > { %p2502_p4 = por %p2501_p8, %p2500_p0 }
 0x44e   : > { %p2503_p7 = pnand %p2502_p4, %p2496_p5 }
 0x450   : > { %2506 = shalt.err (!%p2503_p7)
}
 0x451   : > { %2084 = dma.vmem_to_hbm [thread:$0]  (%p3596_p2), %s3398_s1, 16, %s3396_s26, %s1641_s8  }
 0x452 PF: > { %s3597_s9 = sld [smem:[#allocation25_spill]]  ;;  %s3598_s25 = sld [smem:[#allocation41_spill]] }
 0x453   : > { %p2101_p1 = scmp.ge.s32.totalorder %s2645_s21, 2 }
 0x458   : > { %s1667_s28 = sand.u32 1, %s3597_s9   ;;  %p3599_p6 = scmp.ne.s32.totalorder %s3598_s25, 0 }
 0x459   : > { %s1668_s14 = scalar_lea.sflag [#allocation4], %s1667_s28 }
 0x45a   : > { %p2094_p11 = pnand %p2101_p1, %p3599_p6 }
 0x45c   : > { %2588 = dma.done.wait (!%p2094_p11), %s1668_s14, 16  }
 0x45d   : > { %2590 = vsyncadd (!%p2094_p11), %s1668_s14, 4294967280  ;;  %s39_s21 = sadd.s32 1, %s2645_s21   ;;  %s3601_s25 = sld [smem:[#allocation26_spill]] }
 0x45e   : > { %p3426_p12 = scmp.ge.s32.totalorder %s39_s21, 6   ;;  %s3602_s26 = sld [smem:[#allocation27_spill]] }
 0x45f   : > { %s3603_s27 = sld [smem:[#allocation39_spill]]  ;;  %s3604_s28 = sld [smem:[#allocation28_spill]] }
 0x460   : > { %s3605_s17 = sld [smem:[#allocation36_spill]]  ;;  %s3606_s14 = sld [smem:[#allocation29_spill]] }
 0x461   : > { %s3607_s1 = sld [smem:[#allocation37_spill]]  ;;  %s3608_s8 = sld [smem:[#allocation33_spill]] }
 0x462   : > { %s3609_s2 = sld [smem:[#allocation34_spill]]  ;;  %s3611_s29 = smov %s2613_s30 }
 0x463   : > { %s3613_s15 = smov %s2625_s16  ;;  %s3616_s18 = smov %s2641_s20 }
 0x464   :  { %38 = sbr.rel (!%p3426_p12) target bundleno = 27 (0x1b), region = 238 }
 0x466   : > { %s3612_s30 = smov %s3605_s17  ;;  %s3615_s17 = smov %s2637_s19 }
 0x467   : > { %s3614_s16 = smov %s3607_s1  ;;  %s3617_s19 = smov %s3608_s8 }
 0x468   : > { %s3618_s20 = smov %s3609_s2 }
 0x46b   :  { %1672 = vsyncpa [#allocation3], 1 }
 0x46c   :  { %1674 = vsyncpa [#allocation3 + $0x1], 1 }
 0x46d   :  { %1675 = vsyncpa [#allocation6], 1 }
 0x46e   :  { %1677 = vsyncpa [#allocation6 + $0x1], 1 }
 0x46f   :  { %1678 = vsyncpa [#allocation9], 1 }
 0x470   :  { %1680 = vsyncpa [#allocation9 + $0x1], 1 }
 0x471   :  { %1681 = vsyncpa [#allocation12], 1 }
 0x472   :  { %1682 = vsyncpa [#allocation16], 1 }
 0x473   :  { %1684 = vsyncpa [#allocation16 + $0x1], 1 }
 0x474   :  { %1685 = vsyncpa [#allocation4], 1 }
 0x475   :  { %1687 = vsyncpa [#allocation4 + $0x1], 1 }

</bundles_post_ra>
